<compile_context>
chip_gen: v7x
topology: tpu7x:2x2x1
jax: 0.10.0
libtpu: 0.0.40
codegen_flags: <defaults>
</compile_context>

<pallas_src>
import functools
import math

import jax
import jax.numpy as jnp
from jax.experimental import pallas as pl
from jax.experimental.pallas import tpu as pltpu


LANE = 128
_LAYER_KEYS = ("wq", "bq", "wk", "bk", "wv", "bv", "wo", "bo",
               "g1", "be1", "w1", "b1", "w2", "b2", "g2", "be2")
_LAYER_NPARAMS = len(_LAYER_KEYS)


# ----------------------------------------------------------------------------
# padding helpers (wrapper side)
# ----------------------------------------------------------------------------
def _ceil(n, m=LANE):
    return ((n + m - 1) // m) * m


def _pad2(w, rows, cols, dtype=jnp.bfloat16):
    return jnp.zeros((rows, cols), dtype).at[:w.shape[0], :w.shape[1]].set(
        w.astype(dtype))


def _pad_row(b, cols, dtype=jnp.float32):
    b = jnp.asarray(b, dtype).reshape(1, -1)
    return jnp.zeros((1, cols), dtype).at[:, :b.shape[-1]].set(b)


def _pad_last(x, to):
    pad = to - x.shape[-1]
    if pad == 0:
        return x
    return jnp.pad(x, [(0, 0)] * (x.ndim - 1) + [(0, pad)])


# ----------------------------------------------------------------------------
# shared in-kernel transformer encoder layer (post-norm, eval-mode dropout)
# ----------------------------------------------------------------------------
def _layernorm(x, g, b, d_real):
    # padding lanes of x are exactly zero, so sums over the padded width are exact
    inv_d = 1.0 / float(d_real)
    mu = jnp.sum(x, axis=-1, keepdims=True) * inv_d
    var = jnp.sum(x * x, axis=-1, keepdims=True) * inv_d - mu * mu
    return (x - mu) * jax.lax.rsqrt(var + 1e-5) * g + b


def _transformer_layer(x, lw, *, n_heads, d_real):
    """x: (S, Dp) float32, padding lanes (>= d_real per head block) are zero."""
    (wq, bq, wk, bk, wv, bv, wo, bo,
     g1, be1, w1, b1, w2, b2, g2, be2) = lw
    S, Dp = x.shape
    H = n_heads
    hd = Dp // H
    xb = x.astype(jnp.bfloat16)

    # 1/sqrt(head_dim) is already folded into wq/bq.
    q = jnp.dot(xb, wq[...], preferred_element_type=jnp.float32) + bq[...]
    k = jnp.dot(xb, wk[...], preferred_element_type=jnp.float32) + bk[...]
    v = jnp.dot(xb, wv[...], preferred_element_type=jnp.float32) + bv[...]

    # single batched attention over the head axis (no per-head loop)
    qh = q.reshape(S, H, hd).transpose(1, 0, 2).astype(jnp.bfloat16)   # (H, S, hd)
    kh = k.reshape(S, H, hd).transpose(1, 0, 2).astype(jnp.bfloat16)
    vh = v.reshape(S, H, hd).transpose(1, 0, 2).astype(jnp.bfloat16)

    s = jnp.einsum("hqd,hkd->hqk", qh, kh,
                   preferred_element_type=jnp.float32)                 # (H, S, S)
    s = s - jnp.max(s, axis=-1, keepdims=True)
    p = jnp.exp(s)
    p = p * pl.reciprocal(jnp.sum(p, axis=-1, keepdims=True), approx=True)
    ctx = jnp.einsum("hqk,hkd->hqd", p.astype(jnp.bfloat16), vh,
                     preferred_element_type=jnp.float32)               # (H, S, hd)
    ctx = ctx.transpose(1, 0, 2).reshape(S, Dp)

    attn = jnp.dot(ctx.astype(jnp.bfloat16), wo[...],
                   preferred_element_type=jnp.float32) + bo[...]

    x1 = _layernorm(x + attn, g1[...], be1[...], d_real)
    h1 = jnp.maximum(
        jnp.dot(x1.astype(jnp.bfloat16), w1[...],
                preferred_element_type=jnp.float32) + b1[...], 0.0)
    ff = jnp.dot(h1.astype(jnp.bfloat16), w2[...],
                 preferred_element_type=jnp.float32) + b2[...]
    return _layernorm(x1 + ff, g2[...], be2[...], d_real)


# ----------------------------------------------------------------------------
# fused stage kernels (one batch element per grid step)
# ----------------------------------------------------------------------------
def _backbone_kernel(x_ref, pos_ref, uidx_ref,
                     wt_ref, bt_ref, wp_ref, bp_ref,
                     *rest, n_heads, d_real):
    lw = rest[:_LAYER_NPARAMS]
    out_ref, pemb_ref = rest[_LAYER_NPARAMS:]

    x = x_ref[0].astype(jnp.bfloat16)             # (Nu, IN_P)
    pos = pos_ref[0].astype(jnp.float32)          # (N, POS_P)
    uidx = uidx_ref[0]                            # (Nu, 1) int32
    Nu = uidx.shape[0]
    N = pos.shape[0]

    # gather raw positions of the visible tokens via a one-hot matmul
    col = jax.lax.broadcasted_iota(jnp.int32, (Nu, N), 1)
    gmat = (col == uidx).astype(jnp.float32)                           # (Nu, N)
    pos_u = jnp.dot(gmat, pos, preferred_element_type=jnp.float32)     # (Nu, POS_P)

    tok = jnp.dot(x, wt_ref[...], preferred_element_type=jnp.float32) + bt_ref[...]
    pemb = jnp.dot(pos_u.astype(jnp.bfloat16), wp_ref[...],
                   preferred_element_type=jnp.float32) + bp_ref[...]

    y = _transformer_layer(tok + pemb, lw, n_heads=n_heads, d_real=d_real)
    out_ref[0] = y.astype(out_ref.dtype)
    pemb_ref[0] = pemb.astype(pemb_ref.dtype)


def _mae_encoder_kernel(x_ref, pemb_ref, we_ref, be_ref,
                        *rest, n_heads, d_real):
    lw = rest[:_LAYER_NPARAMS]
    (out_ref,) = rest[_LAYER_NPARAMS:]

    x = x_ref[0].astype(jnp.bfloat16)             # (Nu, D_P) backbone output
    h = jnp.dot(x, we_ref[...], preferred_element_type=jnp.float32) + be_ref[...]
    h = h + pemb_ref[0].astype(jnp.float32)
    y = _transformer_layer(h, lw, n_heads=n_heads, d_real=d_real)
    out_ref[0] = y.astype(out_ref.dtype)


def _mae_decoder_kernel(x_ref, pos_ref, uidx_ref, midx_ref,
                        wd_ref, bd_ref, wdp_ref, bdp_ref, mtok_ref,
                        *rest, n_heads, d_real):
    lw = rest[:_LAYER_NPARAMS]
    wh_ref, bh_ref, out_ref = rest[_LAYER_NPARAMS:]

    x = x_ref[0].astype(jnp.bfloat16)             # (Nu, D_P) encoder output
    pos = pos_ref[0].astype(jnp.float32)          # (N, POS_P)
    uidx = uidx_ref[0]                            # (1, Nu) int32
    midx = midx_ref[0]                            # (Nm, 1) int32
    N = pos.shape[0]
    Nu = uidx.shape[1]
    Nm = midx.shape[0]

    # project visible tokens to decoder width
    dec_vis = (jnp.dot(x, wd_ref[...], preferred_element_type=jnp.float32)
               + bd_ref[...])                                          # (Nu, D_P)

    # scatter visible tokens into the full sequence (one-hot matmul);
    # masked slots receive the learned mask token.
    row = jax.lax.broadcasted_iota(jnp.int32, (N, Nu), 0)
    smat = (row == uidx).astype(jnp.float32)                           # (N, Nu)
    vis_full = jnp.dot(smat, dec_vis, preferred_element_type=jnp.float32)
    is_vis = jnp.sum(smat, axis=-1, keepdims=True)                     # (N, 1)
    full = vis_full + (1.0 - is_vis) * mtok_ref[...]                   # (N, D_P)

    # decoder positional embedding of all tokens
    dpos = jnp.dot(pos.astype(jnp.bfloat16), wdp_ref[...],
                   preferred_element_type=jnp.float32) + bdp_ref[...]

    y = _transformer_layer(full + dpos, lw, n_heads=n_heads, d_real=d_real)

    # gather masked tokens (one-hot matmul) + reconstruction head
    col = jax.lax.broadcasted_iota(jnp.int32, (Nm, N), 1)
    gmat = (col == midx).astype(jnp.float32)                           # (Nm, N)
    y_m = jnp.dot(gmat, y, preferred_element_type=jnp.float32)         # (Nm, D_P)
    out = (jnp.dot(y_m.astype(jnp.bfloat16), wh_ref[...],
                   preferred_element_type=jnp.float32) + bh_ref[...])
    out_ref[0] = out.astype(out_ref.dtype)


# ----------------------------------------------------------------------------
# pallas_call wrappers
# ----------------------------------------------------------------------------
def _rep(arr):
    shape = arr.shape
    return pl.BlockSpec(shape, lambda b, _n=len(shape): (0,) * _n)


def _layer_list(p):
    return [p[k] for k in _LAYER_KEYS]


def _stage_call(kernel, in_arrays, in_specs, out_specs, out_shape, n_heads, d_real):
    B = in_arrays[0].shape[0]
    return pl.pallas_call(
        functools.partial(kernel, n_heads=n_heads, d_real=d_real),
        out_shape=out_shape,
        grid_spec=pltpu.PrefetchScalarGridSpec(
            num_scalar_prefetch=0, grid=(B,),
            in_specs=in_specs, out_specs=out_specs),
        compiler_params=pltpu.CompilerParams(
            dimension_semantics=("parallel",)),
    )(*in_arrays)


def _backbone_call(params, x_p, pos_p, uidx_col, *, n_heads, d_real):
    B, Nu, INP = x_p.shape
    _, N, POSP = pos_p.shape
    te, bp = params["tok_emb"], params["bb_pos"]
    lw = _layer_list(params["bb_layer"])
    DP = params["bb_layer"]["wo"].shape[1]

    in_arrays = [x_p, pos_p, uidx_col, te["w"], te["b"], bp["w"], bp["b"], *lw]
    in_specs = ([pl.BlockSpec((1, Nu, INP), lambda b: (b, 0, 0)),
                 pl.BlockSpec((1, N, POSP), lambda b: (b, 0, 0)),
                 pl.BlockSpec((1, Nu, 1), lambda b: (b, 0, 0)),
                 _rep(te["w"]), _rep(te["b"]), _rep(bp["w"]), _rep(bp["b"])]
                + [_rep(w) for w in lw])
    out_specs = [pl.BlockSpec((1, Nu, DP), lambda b: (b, 0, 0)),
                 pl.BlockSpec((1, Nu, DP), lambda b: (b, 0, 0))]
    out_shape = [jax.ShapeDtypeStruct((B, Nu, DP), jnp.bfloat16),
                 jax.ShapeDtypeStruct((B, Nu, DP), jnp.bfloat16)]
    return _stage_call(_backbone_kernel, in_arrays, in_specs, out_specs, out_shape,
                       n_heads, d_real)


def _encoder_call(params, bb_out, pemb, *, n_heads, d_real):
    B, Nu, DP = bb_out.shape
    ep = params["enc_proj"]
    lw = _layer_list(params["enc_layer"])

    in_arrays = [bb_out, pemb, ep["w"], ep["b"], *lw]
    in_specs = ([pl.BlockSpec((1, Nu, DP), lambda b: (b, 0, 0)),
                 pl.BlockSpec((1, Nu, DP), lambda b: (b, 0, 0)),
                 _rep(ep["w"]), _rep(ep["b"])]
                + [_rep(w) for w in lw])
    out_specs = pl.BlockSpec((1, Nu, DP), lambda b: (b, 0, 0))
    out_shape = jax.ShapeDtypeStruct((B, Nu, DP), jnp.bfloat16)
    return _stage_call(_mae_encoder_kernel, in_arrays, in_specs, out_specs, out_shape,
                       n_heads, d_real)


def _decoder_call(params, enc_out, pos_p, uidx_row, midx_col, *, n_heads, d_real):
    B, Nu, DP = enc_out.shape
    _, N, POSP = pos_p.shape
    Nm = midx_col.shape[1]
    dp, dpos, hd = params["dec_proj"], params["dec_pos"], params["head"]
    mtok = params["mask_token"]
    lw = _layer_list(params["dec_layer"])
    DDP = params["dec_layer"]["wo"].shape[1]
    OUTP = hd["w"].shape[1]

    in_arrays = [enc_out, pos_p, uidx_row, midx_col,
                 dp["w"], dp["b"], dpos["w"], dpos["b"], mtok,
                 *lw, hd["w"], hd["b"]]
    in_specs = ([pl.BlockSpec((1, Nu, DP), lambda b: (b, 0, 0)),
                 pl.BlockSpec((1, N, POSP), lambda b: (b, 0, 0)),
                 pl.BlockSpec((1, 1, Nu), lambda b: (b, 0, 0)),
                 pl.BlockSpec((1, Nm, 1), lambda b: (b, 0, 0)),
                 _rep(dp["w"]), _rep(dp["b"]), _rep(dpos["w"]), _rep(dpos["b"]),
                 _rep(mtok)]
                + [_rep(w) for w in lw]
                + [_rep(hd["w"]), _rep(hd["b"])])
    out_specs = pl.BlockSpec((1, Nm, OUTP), lambda b: (b, 0, 0))
    out_shape = jax.ShapeDtypeStruct((B, Nm, OUTP), jnp.float32)
    del DDP
    return _stage_call(_mae_decoder_kernel, in_arrays, in_specs, out_specs, out_shape,
                       n_heads, d_real)


# ----------------------------------------------------------------------------
# parameter init (real-sized synthetic params, zero-padded / head-block padded)
# ----------------------------------------------------------------------------
def _init_padded_linear(key, din, dout, scale=0.02):
    w = jax.random.normal(key, (din, dout), jnp.float32) * scale
    return {"w": _pad2(w, _ceil(din), _ceil(dout)),
            "b": jnp.zeros((1, _ceil(dout)), jnp.float32)}


def _init_padded_layer(key, d, n_heads, scale=0.02):
    assert d % n_heads == 0
    dp = _ceil(d)
    assert dp % n_heads == 0
    hd, hdp = d // n_heads, dp // n_heads
    f, fp = 4 * d, _ceil(4 * d)
    ks = jax.random.split(key, 6)
    rnd = lambda k, s: jax.random.normal(k, s, jnp.float32) * scale

    def attn_in(w):   # (d, d) -> (dp, H*hdp); per-head column blocks zero-padded
        out = jnp.zeros((dp, dp), jnp.bfloat16)
        for h in range(n_heads):
            out = out.at[:d, h * hdp:h * hdp + hd].set(
                w[:, h * hd:(h + 1) * hd].astype(jnp.bfloat16))
        return out

    def attn_out(w):  # (d, d) -> (H*hdp, dp); per-head row blocks zero-padded
        out = jnp.zeros((dp, dp), jnp.bfloat16)
        for h in range(n_heads):
            out = out.at[h * hdp:h * hdp + hd, :d].set(
                w[h * hd:(h + 1) * hd, :].astype(jnp.bfloat16))
        return out

    inv_sqrt_hd = 1.0 / math.sqrt(hd)   # attention scale folded into Wq / bq
    return dict(
        wq=attn_in(rnd(ks[0], (d, d)) * inv_sqrt_hd),
        bq=jnp.zeros((1, dp), jnp.float32),
        wk=attn_in(rnd(ks[1], (d, d))), bk=jnp.zeros((1, dp), jnp.float32),
        wv=attn_in(rnd(ks[2], (d, d))), bv=jnp.zeros((1, dp), jnp.float32),
        wo=attn_out(rnd(ks[3], (d, d))), bo=jnp.zeros((1, dp), jnp.float32),
        g1=_pad_row(jnp.ones((d,), jnp.float32), dp),
        be1=jnp.zeros((1, dp), jnp.float32),
        w1=_pad2(rnd(ks[4], (d, f)), dp, fp), b1=jnp.zeros((1, fp), jnp.float32),
        w2=_pad2(rnd(ks[5], (f, d)), fp, dp), b2=jnp.zeros((1, dp), jnp.float32),
        g2=_pad_row(jnp.ones((d,), jnp.float32), dp),
        be2=jnp.zeros((1, dp), jnp.float32),
    )


def init_mae_params(key, *, input_dim, pos_dim, d_bb, d_enc, d_dec, out_dim,
                    bb_heads, enc_heads, dec_heads):
    ks = jax.random.split(key, 10)
    return dict(
        tok_emb=_init_padded_linear(ks[0], input_dim, d_bb),
        bb_pos=_init_padded_linear(ks[1], pos_dim, d_bb),
        bb_layer=_init_padded_layer(ks[2], d_bb, bb_heads),
        enc_proj=_init_padded_linear(ks[3], d_bb, d_enc),
        enc_layer=_init_padded_layer(ks[4], d_enc, enc_heads),
        dec_proj=_init_padded_linear(ks[5], d_enc, d_dec),
        dec_pos=_init_padded_linear(ks[6], pos_dim, d_dec),
        mask_token=_pad_row(
            jax.random.normal(ks[7], (d_dec,), jnp.float32) * 0.02, _ceil(d_dec)),
        dec_layer=_init_padded_layer(ks[8], d_dec, dec_heads),
        head=_init_padded_linear(ks[9], d_dec, out_dim),
    )


# ----------------------------------------------------------------------------
# MAE forward
# ----------------------------------------------------------------------------
def mae_forward(params, unmasked_input, input_positions,
                unmasked_token_indices, masked_token_indices,
                *, bb_heads, enc_heads, dec_heads, d_bb, d_enc, d_dec, out_dim):
    """
    unmasked_input:         (B, N_unmask, input_dim)   visible tokens
    input_positions:        (B, n_tokens, 3)           positions of ALL tokens
    unmasked_token_indices: (B, N_unmask) int
    masked_token_indices:   (B, N_mask)   int
    returns mae_output:     (B, N_mask, mae_output_dim)
    """
    in_p = params["tok_emb"]["w"].shape[0]
    pos_p_dim = params["bb_pos"]["w"].shape[0]

    x_p = _pad_last(unmasked_input.astype(jnp.float32), in_p)
    pos_p = _pad_last(input_positions.astype(jnp.float32), pos_p_dim)
    uidx_col = unmasked_token_indices.astype(jnp.int32)[..., None]    # (B, Nu, 1)
    uidx_row = unmasked_token_indices.astype(jnp.int32)[:, None, :]   # (B, 1, Nu)
    midx_col = masked_token_indices.astype(jnp.int32)[..., None]      # (B, Nm, 1)

    bb_out, pemb = _backbone_call(params, x_p, pos_p, uidx_col,
                                  n_heads=bb_heads, d_real=d_bb)
    enc_out = _encoder_call(params, bb_out, pemb, n_heads=enc_heads, d_real=d_enc)
    mae_p = _decoder_call(params, enc_out, pos_p, uidx_row, midx_col,
                          n_heads=dec_heads, d_real=d_dec)
    return mae_p[:, :, :out_dim]


# ----------------------------------------------------------------------------
# Main
# ----------------------------------------------------------------------------
if __name__ == "__main__":
    B = 2
    mae_n_tokens = 8
    n_points_per_token = 4          # implied grouping; tokens arrive pre-flattened
    N_unmask, N_mask = 6, 2
    input_dimension = 16
    pos_dim = 3
    backbone_n_features = mae_enc_n_features = 32
    mae_dec_n_features = 32
    backbone_n_heads = mae_enc_n_heads = mae_dec_n_heads = 4
    mae_output_dimension = 12

    key = jax.random.PRNGKey(0)
    k_par, k_x, k_pos = jax.random.split(key, 3)

    params = init_mae_params(
        k_par,
        input_dim=input_dimension, pos_dim=pos_dim,
        d_bb=backbone_n_features, d_enc=mae_enc_n_features,
        d_dec=mae_dec_n_features, out_dim=mae_output_dimension,
        bb_heads=backbone_n_heads, enc_heads=mae_enc_n_heads,
        dec_heads=mae_dec_n_heads,
    )

    unmasked_input = jax.random.normal(
        k_x, (B, N_unmask, input_dimension), jnp.float32)
    input_positions = jax.random.normal(
        k_pos, (B, mae_n_tokens, pos_dim), jnp.float32)
    unmasked_token_indices = jnp.array(
        [[0, 1, 2, 4, 5, 7], [1, 2, 3, 4, 6, 7]], jnp.int32)
    masked_token_indices = jnp.array([[3, 6], [0, 5]], jnp.int32)

    out = mae_forward(
        params, unmasked_input, input_positions,
        unmasked_token_indices, masked_token_indices,
        bb_heads=backbone_n_heads, enc_heads=mae_enc_n_heads,
        dec_heads=mae_dec_n_heads,
        d_bb=backbone_n_features, d_enc=mae_enc_n_features,
        d_dec=mae_dec_n_features, out_dim=mae_output_dimension,
    )
    out = jax.block_until_ready(out)
    assert out.shape == (B, N_mask, mae_output_dimension)
    assert bool(jnp.all(jnp.isfinite(out)))
    print("KERNEL_OK")
</pallas_src>

<mosaic_0001>
module attributes {stable_mosaic.version = 11 : i64} {
  func.func @_backbone_kernel(%arg0: i32, %arg1: memref<1x6x128xf32, #tpu.memory_space<vmem>>, %arg2: memref<1x8x128xf32, #tpu.memory_space<vmem>>, %arg3: memref<1x6x1xi32, #tpu.memory_space<vmem>>, %arg4: memref<128x128xbf16, #tpu.memory_space<vmem>>, %arg5: memref<1x128xf32, #tpu.memory_space<vmem>>, %arg6: memref<128x128xbf16, #tpu.memory_space<vmem>>, %arg7: memref<1x128xf32, #tpu.memory_space<vmem>>, %arg8: memref<128x128xbf16, #tpu.memory_space<vmem>>, %arg9: memref<1x128xf32, #tpu.memory_space<vmem>>, %arg10: memref<128x128xbf16, #tpu.memory_space<vmem>>, %arg11: memref<1x128xf32, #tpu.memory_space<vmem>>, %arg12: memref<128x128xbf16, #tpu.memory_space<vmem>>, %arg13: memref<1x128xf32, #tpu.memory_space<vmem>>, %arg14: memref<128x128xbf16, #tpu.memory_space<vmem>>, %arg15: memref<1x128xf32, #tpu.memory_space<vmem>>, %arg16: memref<1x128xf32, #tpu.memory_space<vmem>>, %arg17: memref<1x128xf32, #tpu.memory_space<vmem>>, %arg18: memref<128x128xbf16, #tpu.memory_space<vmem>>, %arg19: memref<1x128xf32, #tpu.memory_space<vmem>>, %arg20: memref<128x128xbf16, #tpu.memory_space<vmem>>, %arg21: memref<1x128xf32, #tpu.memory_space<vmem>>, %arg22: memref<1x128xf32, #tpu.memory_space<vmem>>, %arg23: memref<1x128xf32, #tpu.memory_space<vmem>>, %arg24: memref<1x6x128xbf16, #tpu.memory_space<vmem>>, %arg25: memref<1x6x128xbf16, #tpu.memory_space<vmem>>) attributes {dimension_semantics = [#tpu.dimension_semantics<parallel>], iteration_bounds = array<i64: 2>, scalar_prefetch = 0 : i64, scratch_operands = 0 : i64, tpu.core_type = #tpu.core_type<tc>, window_params = [{transform_indices = @transform_0, window_bounds = array<i64: 1, 6, 128>}, {transform_indices = @transform_1, window_bounds = array<i64: 1, 8, 128>}, {transform_indices = @transform_2, window_bounds = array<i64: 1, 6, 1>}, {pipeline_mode = #tpu.pipeline_mode<synchronous>, transform_indices = @transform_3, window_bounds = array<i64: 128, 128>}, {pipeline_mode = #tpu.pipeline_mode<synchronous>, transform_indices = @transform_4, window_bounds = array<i64: 1, 128>}, {pipeline_mode = #tpu.pipeline_mode<synchronous>, transform_indices = @transform_5, window_bounds = array<i64: 128, 128>}, {pipeline_mode = #tpu.pipeline_mode<synchronous>, transform_indices = @transform_6, window_bounds = array<i64: 1, 128>}, {pipeline_mode = #tpu.pipeline_mode<synchronous>, transform_indices = @transform_7, window_bounds = array<i64: 128, 128>}, {pipeline_mode = #tpu.pipeline_mode<synchronous>, transform_indices = @transform_8, window_bounds = array<i64: 1, 128>}, {pipeline_mode = #tpu.pipeline_mode<synchronous>, transform_indices = @transform_9, window_bounds = array<i64: 128, 128>}, {pipeline_mode = #tpu.pipeline_mode<synchronous>, transform_indices = @transform_10, window_bounds = array<i64: 1, 128>}, {pipeline_mode = #tpu.pipeline_mode<synchronous>, transform_indices = @transform_11, window_bounds = array<i64: 128, 128>}, {pipeline_mode = #tpu.pipeline_mode<synchronous>, transform_indices = @transform_12, window_bounds = array<i64: 1, 128>}, {pipeline_mode = #tpu.pipeline_mode<synchronous>, transform_indices = @transform_13, window_bounds = array<i64: 128, 128>}, {pipeline_mode = #tpu.pipeline_mode<synchronous>, transform_indices = @transform_14, window_bounds = array<i64: 1, 128>}, {pipeline_mode = #tpu.pipeline_mode<synchronous>, transform_indices = @transform_15, window_bounds = array<i64: 1, 128>}, {pipeline_mode = #tpu.pipeline_mode<synchronous>, transform_indices = @transform_16, window_bounds = array<i64: 1, 128>}, {pipeline_mode = #tpu.pipeline_mode<synchronous>, transform_indices = @transform_17, window_bounds = array<i64: 128, 128>}, {pipeline_mode = #tpu.pipeline_mode<synchronous>, transform_indices = @transform_18, window_bounds = array<i64: 1, 128>}, {pipeline_mode = #tpu.pipeline_mode<synchronous>, transform_indices = @transform_19, window_bounds = array<i64: 128, 128>}, {pipeline_mode = #tpu.pipeline_mode<synchronous>, transform_indices = @transform_20, window_bounds = array<i64: 1, 128>}, {pipeline_mode = #tpu.pipeline_mode<synchronous>, transform_indices = @transform_21, window_bounds = array<i64: 1, 128>}, {pipeline_mode = #tpu.pipeline_mode<synchronous>, transform_indices = @transform_22, window_bounds = array<i64: 1, 128>}, {transform_indices = @transform_23, window_bounds = array<i64: 1, 6, 128>}, {transform_indices = @transform_24, window_bounds = array<i64: 1, 6, 128>}]} {
    %c0 = arith.constant 0 : index
    %c0_0 = arith.constant 0 : index
    %c0_1 = arith.constant 0 : index
    %0 = vector.load %arg1[%c0, %c0_0, %c0_1] : memref<1x6x128xf32, #tpu.memory_space<vmem>>, vector<1x6x128xf32>
    %1 = vector.shape_cast %0 : vector<1x6x128xf32> to vector<6x128xf32>
    %2 = arith.truncf %1 : vector<6x128xf32> to vector<6x128xbf16>
    %c0_2 = arith.constant 0 : index
    %c0_3 = arith.constant 0 : index
    %c0_4 = arith.constant 0 : index
    %3 = vector.load %arg2[%c0_2, %c0_3, %c0_4] : memref<1x8x128xf32, #tpu.memory_space<vmem>>, vector<1x8x128xf32>
    %4 = vector.shape_cast %3 : vector<1x8x128xf32> to vector<8x128xf32>
    %c0_5 = arith.constant 0 : index
    %c0_6 = arith.constant 0 : index
    %c0_7 = arith.constant 0 : index
    %5 = vector.load %arg3[%c0_5, %c0_6, %c0_7] : memref<1x6x1xi32, #tpu.memory_space<vmem>>, vector<1x6x1xi32>
    %6 = vector.shape_cast %5 : vector<1x6x1xi32> to vector<6x1xi32>
    %7 = tpu.iota {dimensions = array<i32: 1>} : vector<6x8xi32>
    %8 = vector.broadcast %6 : vector<6x1xi32> to vector<6x8xi32>
    %9 = arith.cmpi eq, %7, %8 : vector<6x8xi32>
    %10 = arith.extui %9 : vector<6x8xi1> to vector<6x8xi32>
    %11 = arith.sitofp %10 : vector<6x8xi32> to vector<6x8xf32>
    %cst = arith.constant dense<0.000000e+00> : vector<6x128xf32>
    %12 = tpu.matmul %11, %4, %cst {dimension_numbers = #tpu.dot_dimension_numbers<[1], [0], [0], [1], [0, 0, 1, 1], [], []>} : vector<6x8xf32>, vector<8x128xf32>, vector<6x128xf32> -> vector<6x128xf32>
    %c0_8 = arith.constant 0 : index
    %c0_9 = arith.constant 0 : index
    %13 = vector.load %arg4[%c0_8, %c0_9] : memref<128x128xbf16, #tpu.memory_space<vmem>>, vector<128x128xbf16>
    %cst_10 = arith.constant dense<0.000000e+00> : vector<6x128xf32>
    %14 = tpu.matmul %2, %13, %cst_10 {dimension_numbers = #tpu.dot_dimension_numbers<[1], [0], [0], [1], [0, 0, 1, 1], [], []>} : vector<6x128xbf16>, vector<128x128xbf16>, vector<6x128xf32> -> vector<6x128xf32>
    %c0_11 = arith.constant 0 : index
    %c0_12 = arith.constant 0 : index
    %15 = vector.load %arg5[%c0_11, %c0_12] : memref<1x128xf32, #tpu.memory_space<vmem>>, vector<1x128xf32>
    %16 = vector.broadcast %15 : vector<1x128xf32> to vector<6x128xf32>
    %17 = arith.addf %14, %16 : vector<6x128xf32>
    %18 = arith.truncf %12 : vector<6x128xf32> to vector<6x128xbf16>
    %c0_13 = arith.constant 0 : index
    %c0_14 = arith.constant 0 : index
    %19 = vector.load %arg6[%c0_13, %c0_14] : memref<128x128xbf16, #tpu.memory_space<vmem>>, vector<128x128xbf16>
    %cst_15 = arith.constant dense<0.000000e+00> : vector<6x128xf32>
    %20 = tpu.matmul %18, %19, %cst_15 {dimension_numbers = #tpu.dot_dimension_numbers<[1], [0], [0], [1], [0, 0, 1, 1], [], []>} : vector<6x128xbf16>, vector<128x128xbf16>, vector<6x128xf32> -> vector<6x128xf32>
    %c0_16 = arith.constant 0 : index
    %c0_17 = arith.constant 0 : index
    %21 = vector.load %arg7[%c0_16, %c0_17] : memref<1x128xf32, #tpu.memory_space<vmem>>, vector<1x128xf32>
    %22 = vector.broadcast %21 : vector<1x128xf32> to vector<6x128xf32>
    %23 = arith.addf %20, %22 : vector<6x128xf32>
    %24 = arith.addf %17, %23 : vector<6x128xf32>
    %25 = arith.truncf %24 : vector<6x128xf32> to vector<6x128xbf16>
    %c0_18 = arith.constant 0 : index
    %c0_19 = arith.constant 0 : index
    %26 = vector.load %arg8[%c0_18, %c0_19] : memref<128x128xbf16, #tpu.memory_space<vmem>>, vector<128x128xbf16>
    %cst_20 = arith.constant dense<0.000000e+00> : vector<6x128xf32>
    %27 = tpu.matmul %25, %26, %cst_20 {dimension_numbers = #tpu.dot_dimension_numbers<[1], [0], [0], [1], [0, 0, 1, 1], [], []>} : vector<6x128xbf16>, vector<128x128xbf16>, vector<6x128xf32> -> vector<6x128xf32>
    %c0_21 = arith.constant 0 : index
    %c0_22 = arith.constant 0 : index
    %28 = vector.load %arg9[%c0_21, %c0_22] : memref<1x128xf32, #tpu.memory_space<vmem>>, vector<1x128xf32>
    %29 = vector.broadcast %28 : vector<1x128xf32> to vector<6x128xf32>
    %30 = arith.addf %27, %29 : vector<6x128xf32>
    %c0_23 = arith.constant 0 : index
    %c0_24 = arith.constant 0 : index
    %31 = vector.load %arg10[%c0_23, %c0_24] : memref<128x128xbf16, #tpu.memory_space<vmem>>, vector<128x128xbf16>
    %cst_25 = arith.constant dense<0.000000e+00> : vector<6x128xf32>
    %32 = tpu.matmul %25, %31, %cst_25 {dimension_numbers = #tpu.dot_dimension_numbers<[1], [0], [0], [1], [0, 0, 1, 1], [], []>} : vector<6x128xbf16>, vector<128x128xbf16>, vector<6x128xf32> -> vector<6x128xf32>
    %c0_26 = arith.constant 0 : index
    %c0_27 = arith.constant 0 : index
    %33 = vector.load %arg11[%c0_26, %c0_27] : memref<1x128xf32, #tpu.memory_space<vmem>>, vector<1x128xf32>
    %34 = vector.broadcast %33 : vector<1x128xf32> to vector<6x128xf32>
    %35 = arith.addf %32, %34 : vector<6x128xf32>
    %c0_28 = arith.constant 0 : index
    %c0_29 = arith.constant 0 : index
    %36 = vector.load %arg12[%c0_28, %c0_29] : memref<128x128xbf16, #tpu.memory_space<vmem>>, vector<128x128xbf16>
    %cst_30 = arith.constant dense<0.000000e+00> : vector<6x128xf32>
    %37 = tpu.matmul %25, %36, %cst_30 {dimension_numbers = #tpu.dot_dimension_numbers<[1], [0], [0], [1], [0, 0, 1, 1], [], []>} : vector<6x128xbf16>, vector<128x128xbf16>, vector<6x128xf32> -> vector<6x128xf32>
    %c0_31 = arith.constant 0 : index
    %c0_32 = arith.constant 0 : index
    %38 = vector.load %arg13[%c0_31, %c0_32] : memref<1x128xf32, #tpu.memory_space<vmem>>, vector<1x128xf32>
    %39 = vector.broadcast %38 : vector<1x128xf32> to vector<6x128xf32>
    %40 = arith.addf %37, %39 : vector<6x128xf32>
    %41 = vector.shape_cast %30 : vector<6x128xf32> to vector<6x4x32xf32>
    %42 = tpu.transpose %41, [1, 0, 2] : vector<6x4x32xf32> -> vector<4x6x32xf32>
    %43 = arith.truncf %42 : vector<4x6x32xf32> to vector<4x6x32xbf16>
    %44 = vector.shape_cast %35 : vector<6x128xf32> to vector<6x4x32xf32>
    %45 = tpu.transpose %44, [1, 0, 2] : vector<6x4x32xf32> -> vector<4x6x32xf32>
    %46 = arith.truncf %45 : vector<4x6x32xf32> to vector<4x6x32xbf16>
    %47 = vector.shape_cast %40 : vector<6x128xf32> to vector<6x4x32xf32>
    %48 = tpu.transpose %47, [1, 0, 2] : vector<6x4x32xf32> -> vector<4x6x32xf32>
    %49 = arith.truncf %48 : vector<4x6x32xf32> to vector<4x6x32xbf16>
    "tpu.trace_start"() <{level = 10 : i32, message = "hqd,hkd->hqk"}> : () -> ()
    %cst_33 = arith.constant dense<0.000000e+00> : vector<4x6x6xf32>
    %50 = tpu.matmul %43, %46, %cst_33 {dimension_numbers = #tpu.dot_dimension_numbers<[2], [2], [1], [1], [0, 0, 0, 1, 1, 1], [0], [0]>} : vector<4x6x32xbf16>, vector<4x6x32xbf16>, vector<4x6x6xf32> -> vector<4x6x6xf32>
    "tpu.trace_stop"() : () -> ()
    %cst_34 = arith.constant dense<0xFF800000> : vector<4x6xf32>
    %51 = vector.multi_reduction <maximumf>, %50, %cst_34 [2] : vector<4x6x6xf32> to vector<4x6xf32>
    %52 = vector.shape_cast %51 : vector<4x6xf32> to vector<4x6x1xf32>
    %53 = vector.broadcast %52 : vector<4x6x1xf32> to vector<4x6x6xf32>
    %54 = arith.subf %50, %53 : vector<4x6x6xf32>
    %55 = math.exp %54 : vector<4x6x6xf32>
    %cst_35 = arith.constant dense<0.000000e+00> : vector<4x6xf32>
    %56 = vector.multi_reduction <add>, %55, %cst_35 [2] : vector<4x6x6xf32> to vector<4x6xf32>
    %57 = vector.shape_cast %56 : vector<4x6xf32> to vector<4x6x1xf32>
    %58 = tpu.reciprocal %57 {approx = true} : vector<4x6x1xf32> -> vector<4x6x1xf32>
    %59 = vector.broadcast %58 : vector<4x6x1xf32> to vector<4x6x6xf32>
    %60 = arith.mulf %55, %59 : vector<4x6x6xf32>
    %61 = arith.truncf %60 : vector<4x6x6xf32> to vector<4x6x6xbf16>
    "tpu.trace_start"() <{level = 10 : i32, message = "hqk,hkd->hqd"}> : () -> ()
    %cst_36 = arith.constant dense<0.000000e+00> : vector<4x6x32xf32>
    %62 = tpu.matmul %61, %49, %cst_36 {dimension_numbers = #tpu.dot_dimension_numbers<[2], [1], [1], [2], [0, 0, 0, 1, 1, 2], [0], [0]>} : vector<4x6x6xbf16>, vector<4x6x32xbf16>, vector<4x6x32xf32> -> vector<4x6x32xf32>
    "tpu.trace_stop"() : () -> ()
    %63 = tpu.transpose %62, [1, 0, 2] : vector<4x6x32xf32> -> vector<6x4x32xf32>
    %64 = vector.shape_cast %63 : vector<6x4x32xf32> to vector<6x128xf32>
    %65 = arith.truncf %64 : vector<6x128xf32> to vector<6x128xbf16>
    %c0_37 = arith.constant 0 : index
    %c0_38 = arith.constant 0 : index
    %66 = vector.load %arg14[%c0_37, %c0_38] : memref<128x128xbf16, #tpu.memory_space<vmem>>, vector<128x128xbf16>
    %cst_39 = arith.constant dense<0.000000e+00> : vector<6x128xf32>
    %67 = tpu.matmul %65, %66, %cst_39 {dimension_numbers = #tpu.dot_dimension_numbers<[1], [0], [0], [1], [0, 0, 1, 1], [], []>} : vector<6x128xbf16>, vector<128x128xbf16>, vector<6x128xf32> -> vector<6x128xf32>
    %c0_40 = arith.constant 0 : index
    %c0_41 = arith.constant 0 : index
    %68 = vector.load %arg15[%c0_40, %c0_41] : memref<1x128xf32, #tpu.memory_space<vmem>>, vector<1x128xf32>
    %69 = vector.broadcast %68 : vector<1x128xf32> to vector<6x128xf32>
    %70 = arith.addf %67, %69 : vector<6x128xf32>
    %71 = arith.addf %24, %70 : vector<6x128xf32>
    %c0_42 = arith.constant 0 : index
    %c0_43 = arith.constant 0 : index
    %72 = vector.load %arg16[%c0_42, %c0_43] : memref<1x128xf32, #tpu.memory_space<vmem>>, vector<1x128xf32>
    %c0_44 = arith.constant 0 : index
    %c0_45 = arith.constant 0 : index
    %73 = vector.load %arg17[%c0_44, %c0_45] : memref<1x128xf32, #tpu.memory_space<vmem>>, vector<1x128xf32>
    %cst_46 = arith.constant dense<0.000000e+00> : vector<6xf32>
    %74 = vector.multi_reduction <add>, %71, %cst_46 [1] : vector<6x128xf32> to vector<6xf32>
    %75 = vector.shape_cast %74 : vector<6xf32> to vector<6x1xf32>
    %cst_47 = arith.constant 3.125000e-02 : f32
    %76 = vector.broadcast %cst_47 : f32 to vector<6x1xf32>
    %77 = arith.mulf %75, %76 : vector<6x1xf32>
    %78 = arith.mulf %71, %71 : vector<6x128xf32>
    %cst_48 = arith.constant dense<0.000000e+00> : vector<6xf32>
    %79 = vector.multi_reduction <add>, %78, %cst_48 [1] : vector<6x128xf32> to vector<6xf32>
    %80 = vector.shape_cast %79 : vector<6xf32> to vector<6x1xf32>
    %cst_49 = arith.constant 3.125000e-02 : f32
    %81 = vector.broadcast %cst_49 : f32 to vector<6x1xf32>
    %82 = arith.mulf %80, %81 : vector<6x1xf32>
    %83 = arith.mulf %77, %77 : vector<6x1xf32>
    %84 = arith.subf %82, %83 : vector<6x1xf32>
    %85 = vector.broadcast %77 : vector<6x1xf32> to vector<6x128xf32>
    %86 = arith.subf %71, %85 : vector<6x128xf32>
    %cst_50 = arith.constant 9.99999974E-6 : f32
    %87 = vector.broadcast %cst_50 : f32 to vector<6x1xf32>
    %88 = arith.addf %84, %87 : vector<6x1xf32>
    %89 = math.rsqrt %88 : vector<6x1xf32>
    %90 = vector.broadcast %89 : vector<6x1xf32> to vector<6x128xf32>
    %91 = arith.mulf %86, %90 : vector<6x128xf32>
    %92 = vector.broadcast %72 : vector<1x128xf32> to vector<6x128xf32>
    %93 = arith.mulf %91, %92 : vector<6x128xf32>
    %94 = vector.broadcast %73 : vector<1x128xf32> to vector<6x128xf32>
    %95 = arith.addf %93, %94 : vector<6x128xf32>
    %96 = arith.truncf %95 : vector<6x128xf32> to vector<6x128xbf16>
    %c0_51 = arith.constant 0 : index
    %c0_52 = arith.constant 0 : index
    %97 = vector.load %arg18[%c0_51, %c0_52] : memref<128x128xbf16, #tpu.memory_space<vmem>>, vector<128x128xbf16>
    %cst_53 = arith.constant dense<0.000000e+00> : vector<6x128xf32>
    %98 = tpu.matmul %96, %97, %cst_53 {dimension_numbers = #tpu.dot_dimension_numbers<[1], [0], [0], [1], [0, 0, 1, 1], [], []>} : vector<6x128xbf16>, vector<128x128xbf16>, vector<6x128xf32> -> vector<6x128xf32>
    %c0_54 = arith.constant 0 : index
    %c0_55 = arith.constant 0 : index
    %99 = vector.load %arg19[%c0_54, %c0_55] : memref<1x128xf32, #tpu.memory_space<vmem>>, vector<1x128xf32>
    %100 = vector.broadcast %99 : vector<1x128xf32> to vector<6x128xf32>
    %101 = arith.addf %98, %100 : vector<6x128xf32>
    %cst_56 = arith.constant 0.000000e+00 : f32
    %102 = vector.broadcast %cst_56 : f32 to vector<6x128xf32>
    %103 = arith.maximumf %101, %102 : vector<6x128xf32>
    %104 = arith.truncf %103 : vector<6x128xf32> to vector<6x128xbf16>
    %c0_57 = arith.constant 0 : index
    %c0_58 = arith.constant 0 : index
    %105 = vector.load %arg20[%c0_57, %c0_58] : memref<128x128xbf16, #tpu.memory_space<vmem>>, vector<128x128xbf16>
    %cst_59 = arith.constant dense<0.000000e+00> : vector<6x128xf32>
    %106 = tpu.matmul %104, %105, %cst_59 {dimension_numbers = #tpu.dot_dimension_numbers<[1], [0], [0], [1], [0, 0, 1, 1], [], []>} : vector<6x128xbf16>, vector<128x128xbf16>, vector<6x128xf32> -> vector<6x128xf32>
    %c0_60 = arith.constant 0 : index
    %c0_61 = arith.constant 0 : index
    %107 = vector.load %arg21[%c0_60, %c0_61] : memref<1x128xf32, #tpu.memory_space<vmem>>, vector<1x128xf32>
    %108 = vector.broadcast %107 : vector<1x128xf32> to vector<6x128xf32>
    %109 = arith.addf %106, %108 : vector<6x128xf32>
    %110 = arith.addf %95, %109 : vector<6x128xf32>
    %c0_62 = arith.constant 0 : index
    %c0_63 = arith.constant 0 : index
    %111 = vector.load %arg22[%c0_62, %c0_63] : memref<1x128xf32, #tpu.memory_space<vmem>>, vector<1x128xf32>
    %c0_64 = arith.constant 0 : index
    %c0_65 = arith.constant 0 : index
    %112 = vector.load %arg23[%c0_64, %c0_65] : memref<1x128xf32, #tpu.memory_space<vmem>>, vector<1x128xf32>
    %cst_66 = arith.constant dense<0.000000e+00> : vector<6xf32>
    %113 = vector.multi_reduction <add>, %110, %cst_66 [1] : vector<6x128xf32> to vector<6xf32>
    %114 = vector.shape_cast %113 : vector<6xf32> to vector<6x1xf32>
    %cst_67 = arith.constant 3.125000e-02 : f32
    %115 = vector.broadcast %cst_67 : f32 to vector<6x1xf32>
    %116 = arith.mulf %114, %115 : vector<6x1xf32>
    %117 = arith.mulf %110, %110 : vector<6x128xf32>
    %cst_68 = arith.constant dense<0.000000e+00> : vector<6xf32>
    %118 = vector.multi_reduction <add>, %117, %cst_68 [1] : vector<6x128xf32> to vector<6xf32>
    %119 = vector.shape_cast %118 : vector<6xf32> to vector<6x1xf32>
    %cst_69 = arith.constant 3.125000e-02 : f32
    %120 = vector.broadcast %cst_69 : f32 to vector<6x1xf32>
    %121 = arith.mulf %119, %120 : vector<6x1xf32>
    %122 = arith.mulf %116, %116 : vector<6x1xf32>
    %123 = arith.subf %121, %122 : vector<6x1xf32>
    %124 = vector.broadcast %116 : vector<6x1xf32> to vector<6x128xf32>
    %125 = arith.subf %110, %124 : vector<6x128xf32>
    %cst_70 = arith.constant 9.99999974E-6 : f32
    %126 = vector.broadcast %cst_70 : f32 to vector<6x1xf32>
    %127 = arith.addf %123, %126 : vector<6x1xf32>
    %128 = math.rsqrt %127 : vector<6x1xf32>
    %129 = vector.broadcast %128 : vector<6x1xf32> to vector<6x128xf32>
    %130 = arith.mulf %125, %129 : vector<6x128xf32>
    %131 = vector.broadcast %111 : vector<1x128xf32> to vector<6x128xf32>
    %132 = arith.mulf %130, %131 : vector<6x128xf32>
    %133 = vector.broadcast %112 : vector<1x128xf32> to vector<6x128xf32>
    %134 = arith.addf %132, %133 : vector<6x128xf32>
    %135 = arith.truncf %134 : vector<6x128xf32> to vector<6x128xbf16>
    %c0_71 = arith.constant 0 : index
    %c0_72 = arith.constant 0 : index
    %c0_73 = arith.constant 0 : index
    %136 = vector.load %arg24[%c0_71, %c0_72, %c0_73] : memref<1x6x128xbf16, #tpu.memory_space<vmem>>, vector<1x6x128xbf16>
    %137 = vector.shape_cast %136 : vector<1x6x128xbf16> to vector<6x128xbf16>
    %138 = vector.shape_cast %135 : vector<6x128xbf16> to vector<1x6x128xbf16>
    tpu.vector_store %arg24[%c0_71, %c0_72, %c0_73], %138 {strides = array<i32>} : memref<1x6x128xbf16, #tpu.memory_space<vmem>>, vector<1x6x128xbf16>,
    %139 = arith.truncf %23 : vector<6x128xf32> to vector<6x128xbf16>
    %c0_74 = arith.constant 0 : index
    %c0_75 = arith.constant 0 : index
    %c0_76 = arith.constant 0 : index
    %140 = vector.load %arg25[%c0_74, %c0_75, %c0_76] : memref<1x6x128xbf16, #tpu.memory_space<vmem>>, vector<1x6x128xbf16>
    %141 = vector.shape_cast %140 : vector<1x6x128xbf16> to vector<6x128xbf16>
    %142 = vector.shape_cast %139 : vector<6x128xbf16> to vector<1x6x128xbf16>
    tpu.vector_store %arg25[%c0_74, %c0_75, %c0_76], %142 {strides = array<i32>} : memref<1x6x128xbf16, #tpu.memory_space<vmem>>, vector<1x6x128xbf16>,
    return
  }
  func.func @transform_0(%arg0: i32) -> (i32, i32, i32) {
    %c0_i32 = arith.constant 0 : i32
    %c0_i32_0 = arith.constant 0 : i32
    %c0_i32_1 = arith.constant 0 : i32
    return %arg0, %c0_i32, %c0_i32_0 : i32, i32, i32
  }
  func.func @transform_1(%arg0: i32) -> (i32, i32, i32) {
    %c0_i32 = arith.constant 0 : i32
    %c0_i32_0 = arith.constant 0 : i32
    %c0_i32_1 = arith.constant 0 : i32
    return %arg0, %c0_i32, %c0_i32_0 : i32, i32, i32
  }
  func.func @transform_2(%arg0: i32) -> (i32, i32, i32) {
    %c0_i32 = arith.constant 0 : i32
    %c0_i32_0 = arith.constant 0 : i32
    %c0_i32_1 = arith.constant 0 : i32
    return %arg0, %c0_i32, %c0_i32_0 : i32, i32, i32
  }
  func.func @transform_3(%arg0: i32) -> (i32, i32) {
    %c0_i32 = arith.constant 0 : i32
    %c0_i32_0 = arith.constant 0 : i32
    %c0_i32_1 = arith.constant 0 : i32
    return %c0_i32, %c0_i32_0 : i32, i32
  }
  func.func @transform_4(%arg0: i32) -> (i32, i32) {
    %c0_i32 = arith.constant 0 : i32
    %c0_i32_0 = arith.constant 0 : i32
    %c0_i32_1 = arith.constant 0 : i32
    return %c0_i32, %c0_i32_0 : i32, i32
  }
  func.func @transform_5(%arg0: i32) -> (i32, i32) {
    %c0_i32 = arith.constant 0 : i32
    %c0_i32_0 = arith.constant 0 : i32
    %c0_i32_1 = arith.constant 0 : i32
    return %c0_i32, %c0_i32_0 : i32, i32
  }
  func.func @transform_6(%arg0: i32) -> (i32, i32) {
    %c0_i32 = arith.constant 0 : i32
    %c0_i32_0 = arith.constant 0 : i32
    %c0_i32_1 = arith.constant 0 : i32
    return %c0_i32, %c0_i32_0 : i32, i32
  }
  func.func @transform_7(%arg0: i32) -> (i32, i32) {
    %c0_i32 = arith.constant 0 : i32
    %c0_i32_0 = arith.constant 0 : i32
    %c0_i32_1 = arith.constant 0 : i32
    return %c0_i32, %c0_i32_0 : i32, i32
  }
  func.func @transform_8(%arg0: i32) -> (i32, i32) {
    %c0_i32 = arith.constant 0 : i32
    %c0_i32_0 = arith.constant 0 : i32
    %c0_i32_1 = arith.constant 0 : i32
    return %c0_i32, %c0_i32_0 : i32, i32
  }
  func.func @transform_9(%arg0: i32) -> (i32, i32) {
    %c0_i32 = arith.constant 0 : i32
    %c0_i32_0 = arith.constant 0 : i32
    %c0_i32_1 = arith.constant 0 : i32
    return %c0_i32, %c0_i32_0 : i32, i32
  }
  func.func @transform_10(%arg0: i32) -> (i32, i32) {
    %c0_i32 = arith.constant 0 : i32
    %c0_i32_0 = arith.constant 0 : i32
    %c0_i32_1 = arith.constant 0 : i32
    return %c0_i32, %c0_i32_0 : i32, i32
  }
  func.func @transform_11(%arg0: i32) -> (i32, i32) {
    %c0_i32 = arith.constant 0 : i32
    %c0_i32_0 = arith.constant 0 : i32
    %c0_i32_1 = arith.constant 0 : i32
    return %c0_i32, %c0_i32_0 : i32, i32
  }
  func.func @transform_12(%arg0: i32) -> (i32, i32) {
    %c0_i32 = arith.constant 0 : i32
    %c0_i32_0 = arith.constant 0 : i32
    %c0_i32_1 = arith.constant 0 : i32
    return %c0_i32, %c0_i32_0 : i32, i32
  }
  func.func @transform_13(%arg0: i32) -> (i32, i32) {
    %c0_i32 = arith.constant 0 : i32
    %c0_i32_0 = arith.constant 0 : i32
    %c0_i32_1 = arith.constant 0 : i32
    return %c0_i32, %c0_i32_0 : i32, i32
  }
  func.func @transform_14(%arg0: i32) -> (i32, i32) {
    %c0_i32 = arith.constant 0 : i32
    %c0_i32_0 = arith.constant 0 : i32
    %c0_i32_1 = arith.constant 0 : i32
    return %c0_i32, %c0_i32_0 : i32, i32
  }
  func.func @transform_15(%arg0: i32) -> (i32, i32) {
    %c0_i32 = arith.constant 0 : i32
    %c0_i32_0 = arith.constant 0 : i32
    %c0_i32_1 = arith.constant 0 : i32
    return %c0_i32, %c0_i32_0 : i32, i32
  }
  func.func @transform_16(%arg0: i32) -> (i32, i32) {
    %c0_i32 = arith.constant 0 : i32
    %c0_i32_0 = arith.constant 0 : i32
    %c0_i32_1 = arith.constant 0 : i32
    return %c0_i32, %c0_i32_0 : i32, i32
  }
  func.func @transform_17(%arg0: i32) -> (i32, i32) {
    %c0_i32 = arith.constant 0 : i32
    %c0_i32_0 = arith.constant 0 : i32
    %c0_i32_1 = arith.constant 0 : i32
    return %c0_i32, %c0_i32_0 : i32, i32
  }
  func.func @transform_18(%arg0: i32) -> (i32, i32) {
    %c0_i32 = arith.constant 0 : i32
    %c0_i32_0 = arith.constant 0 : i32
    %c0_i32_1 = arith.constant 0 : i32
    return %c0_i32, %c0_i32_0 : i32, i32
  }
  func.func @transform_19(%arg0: i32) -> (i32, i32) {
    %c0_i32 = arith.constant 0 : i32
    %c0_i32_0 = arith.constant 0 : i32
    %c0_i32_1 = arith.constant 0 : i32
    return %c0_i32, %c0_i32_0 : i32, i32
  }
  func.func @transform_20(%arg0: i32) -> (i32, i32) {
    %c0_i32 = arith.constant 0 : i32
    %c0_i32_0 = arith.constant 0 : i32
    %c0_i32_1 = arith.constant 0 : i32
    return %c0_i32, %c0_i32_0 : i32, i32
  }
  func.func @transform_21(%arg0: i32) -> (i32, i32) {
    %c0_i32 = arith.constant 0 : i32
    %c0_i32_0 = arith.constant 0 : i32
    %c0_i32_1 = arith.constant 0 : i32
    return %c0_i32, %c0_i32_0 : i32, i32
  }
  func.func @transform_22(%arg0: i32) -> (i32, i32) {
    %c0_i32 = arith.constant 0 : i32
    %c0_i32_0 = arith.constant 0 : i32
    %c0_i32_1 = arith.constant 0 : i32
    return %c0_i32, %c0_i32_0 : i32, i32
  }
  func.func @transform_23(%arg0: i32) -> (i32, i32, i32) {
    %c0_i32 = arith.constant 0 : i32
    %c0_i32_0 = arith.constant 0 : i32
    %c0_i32_1 = arith.constant 0 : i32
    return %arg0, %c0_i32, %c0_i32_0 : i32, i32, i32
  }
  func.func @transform_24(%arg0: i32) -> (i32, i32, i32) {
    %c0_i32 = arith.constant 0 : i32
    %c0_i32_0 = arith.constant 0 : i32
    %c0_i32_1 = arith.constant 0 : i32
    return %arg0, %c0_i32, %c0_i32_0 : i32, i32, i32
  }
}

</mosaic_0001>

<bundles_post_ra>
// kernel: tpu_custom_call.1
= control target key start
LH: loop header
LB: loop body
LE: loop exit
PB: predicated region body
PF: predicated region fallthrough
CT: control target
= control target key end

     0   :  { %s4872_s0 = inlined_call_operand.vmem [shape: f32[2,6,128], index: 0, kind: input, shape index: {}]   ;;  %s4873_s1 = inlined_call_operand.hbm [shape: f32[2,8,128], index: 1, kind: input, shape index: {}]   ;;  %s4874_s2 = inlined_call_operand.vmem [shape: s32[2,6,1], index: 2, kind: input, shape index: {}]   ;;  %s4875_s3 = inlined_call_operand.hbm [shape: bf16[128,128], index: 3, kind: input, shape index: {}]   ;;  %s4876_s4 = inlined_call_operand.hbm [shape: f32[1,128], index: 4, kind: input, shape index: {}]   ;;  %s4877_s5 = inlined_call_operand.vmem [shape: bf16[128,128], index: 5, kind: input, shape index: {}]   ;;  %s4878_s6 = inlined_call_operand.vmem [shape: f32[1,128], index: 6, kind: input, shape index: {}]   ;;  %s4879_s7 = inlined_call_operand.hbm [shape: bf16[128,128], index: 7, kind: input, shape index: {}]   ;;  %s4880_s8 = inlined_call_operand.vmem [shape: f32[1,128], index: 8, kind: input, shape index: {}]   ;;  %s4881_s9 = inlined_call_operand.hbm [shape: bf16[128,128], index: 9, kind: input, shape index: {}]   ;;  %s4882_s10 = inlined_call_operand.vmem [shape: f32[1,128], index: 10, kind: input, shape index: {}]   ;;  %s4883_s11 = inlined_call_operand.hbm [shape: bf16[128,128], index: 11, kind: input, shape index: {}]   ;;  %s4884_s12 = inlined_call_operand.vmem [shape: f32[1,128], index: 12, kind: input, shape index: {}]   ;;  %s4885_s13 = inlined_call_operand.hbm [shape: bf16[128,128], index: 13, kind: input, shape index: {}]   ;;  %s4886_s14 = inlined_call_operand.vmem [shape: f32[1,128], index: 14, kind: input, shape index: {}]   ;;  %s4887_s15 = inlined_call_operand.vmem [shape: f32[1,128], index: 15, kind: input, shape index: {}]   ;;  %s4888_s16 = inlined_call_operand.vmem [shape: f32[1,128], index: 16, kind: input, shape index: {}]   ;;  %s4889_s17 = inlined_call_operand.hbm [shape: bf16[128,128], index: 17, kind: input, shape index: {}]   ;;  %s4890_s18 = inlined_call_operand.vmem [shape: f32[1,128], index: 18, kind: input, shape index: {}]   ;;  %s4891_s19 = inlined_call_operand.hbm [shape: bf16[128,128], index: 19, kind: input, shape index: {}]   ;;  %s4892_s20 = inlined_call_operand.vmem [shape: f32[1,128], index: 20, kind: input, shape index: {}]   ;;  %s4893_s21 = inlined_call_operand.vmem [shape: f32[1,128], index: 21, kind: input, shape index: {}]   ;;  %s4894_s22 = inlined_call_operand.vmem [shape: f32[1,128], index: 22, kind: input, shape index: {}]   ;;  %s4895_s23 = inlined_call_operand.vmem [shape: bf16[2,6,128], index: 23, kind: output, shape index: {0}]   ;;  %s4896_s24 = inlined_call_operand.vmem [shape: bf16[2,6,128], index: 24, kind: output, shape index: {1}]  }
   0x1   :  { %4907 = sst [smem:[#allocation21_spill]] %s4872_s0 }
   0x2   :  { %4908 = sst [smem:[#allocation22_spill]] %s4873_s1 }
   0x3   :  { %4909 = sst [smem:[#allocation23_spill]] %s4874_s2 }
   0x4   :  { %4910 = sst [smem:[#allocation24_spill]] %s4875_s3 }
   0x5   :  { %4911 = sst [smem:[#allocation25_spill]] %s4876_s4 }
   0x6   :  { %4912 = sst [smem:[#allocation26_spill]] %s4877_s5 }
   0x7   :  { %4913 = sst [smem:[#allocation27_spill]] %s4878_s6 }
   0x8   :  { %4914 = sst [smem:[#allocation28_spill]] %s4879_s7 }
   0x9   :  { %4915 = sst [smem:[#allocation29_spill]] %s4880_s8 }
   0xa   :  { %4916 = sst [smem:[#allocation30_spill]] %s4884_s12 }
   0xb   :  { %4917 = sst [smem:[#allocation31_spill]] %s4886_s14 }
   0xc   :  { %4918 = sst [smem:[#allocation32_spill]] %s4887_s15 }
   0xd   :  { %4919 = sst [smem:[#allocation33_spill]] %s4888_s16 }
   0xe   :  { %4920 = sst [smem:[#allocation34_spill]] %s4890_s18 }
   0xf   :  { %4921 = sst [smem:[#allocation35_spill]] %s4892_s20 }
  0x10   :  { %4922 = sst [smem:[#allocation36_spill]] %s4893_s21 }
  0x11   :  { %4923 = sst [smem:[#allocation37_spill]] %s4894_s22 }
  0x12   :  { %4924 = sst [smem:[#allocation38_spill]] %s4895_s23 }
  0x13   :  { %30 = vsyncpa [#allocation3], 0 }
  0x14   :  { %32 = vsyncpa [#allocation3 + $0x1], 0 }
  0x15   :  { %33 = vsyncpa [#allocation5], 0 }
  0x16   :  { %34 = vsyncpa [#allocation8], 0 }
  0x17   :  { %35 = vsyncpa [#allocation11], 0 }
  0x18   :  { %36 = vsyncpa [#allocation14], 0  ;;  %s4225_s5 = smov 0   ;;  %s4227_s26 = smov 0  }
  0x19   :  { %s4229_s27 = smov 0   ;;  %s4231_s28 = smov 0  }
  0x1a LB: > { %s4081_s6 = smov [#allocation4]   ;;  %s4246_s29 = sadd.s32 4294967295, %s4079_s28   ;;  %s4079_s28 = sphi %s4231_s28, %s4962_s28   ;;  %s4075_s27 = sphi %s4229_s27, %s4961_s27   ;;  %s4071_s26 = sphi %s4227_s26, %s4960_s26   ;;  %s4067_s5 = sphi %s4225_s5, %s4959_s5  }
  0x1b   : > { %s609_s2 = sshll.u32 %s4081_s6, 4  ;;  %p3139_p0 = scmp.ge.s32.totalorder %s4079_s28, 1  ;;  %s4251_s2 = int_to_ptr.vmem [resolvable:$true] %s609_s2 }
  0x1c   : > { %p4903_p1 = scmp.eq.s32.totalorder %s4246_s29, 0  ;;  %p597_p2 = scmp.lt.s32.totalorder %s4079_s28, 3 }
  0x1d   : > { %s4082_s7 = smov [#allocation7]   ;;  %s4083_s25 = smov [#allocation10]  }
  0x1e   : > { %p4253_p3 = pnand %p3139_p0, %p597_p2  ;;  %s639_s30 = sshll.u32 %s4082_s7, 4  ;;  %s4265_s30 = int_to_ptr.vmem [resolvable:$true] %s639_s30 }
  0x1f   : > { %s671_s8 = sshll.u32 %s4083_s25, 4  ;;  %s4927_s6 = sld [smem:[#allocation24_spill]]  ;;  %s4267_s8 = int_to_ptr.vmem [resolvable:$true] %s671_s8 }
  0x20   : > { %s4925_s0 = scalar_select %p4253_p3, 1, 0 }
  0x21   : > { %p3594_p4 = pneg %p4253_p3 }
  0x23   : > { %p4261_p5 = pnand %p3594_p4, %p4903_p1 }
  0x25   : > { %s3775_s23 = scalar_lea.hbm %s4927_s6, 1024  ;;  %p4277_p7 = pneg %p4261_p5 }
  0x26   : > { %p3776_p6 = scmp.ne.s32.totalorder %s4927_s6, %s3775_s23  ;;  %p3782_p10 = scmp.lt.u32.totalorder %s3775_s23, %s4927_s6 }
  0x28   : > { %p3778_p8 = pnand %p4277_p7, %p3776_p6 }
  0x2a   : > { %p3779_p9 = pneg %p3778_p8 }
  0x2c   : > { %p3784_p11 = pnand %p3782_p10, %p3779_p9 }
  0x2e   : > { %3787 = shalt.err (!%p3784_p11)
}
  0x2f   : > { %s3788_s21 = scalar_lea.vmem %s4251_s2, 1024  ;;  %p3796_p2 = scmp.lt.s32.totalorder %s4251_s2, %s4251_s2 }
  0x30   : > { %p3789_p12 = scmp.ne.s32.totalorder %s4251_s2, %s3788_s21  ;;  %p3797_p4 = scmp.lt.s32.totalorder %s3788_s21, %s3788_s21 }
  0x32   : > { %p3791_p13 = pnand %p3789_p12, %p4277_p7  ;;  %p3798_p6 = por %p3797_p4, %p3796_p2 }
  0x34   : > { %p3792_p0 = pneg %p3791_p13 }
  0x36   : > { %p3799_p8 = pnand %p3798_p6, %p3792_p0 }
  0x38   : > { %3802 = shalt.err (!%p3799_p8)
}
  0x39   : > { %s4905_s22 = smov 64   ;;  %s4085_s20 = smov 4  }
  0x3a   : > { %3597 = dma.hbm_to_vmem [thread:$0]  (!%p4261_p5), %s4927_s6, 1024, %s4251_s2, [#allocation5], %s4905_s22, %s4905_s22, %s4085_s20  }
  0x3b   : > { %s4929_s18 = sld [smem:[#allocation28_spill]] }
  0x41   : > { %s3803_s21 = scalar_lea.hbm %s4929_s18, 1024 }
  0x42   : > { %p3804_p9 = scmp.ne.s32.totalorder %s4929_s18, %s3803_s21  ;;  %p3810_p12 = scmp.lt.u32.totalorder %s3803_s21, %s4929_s18 }
  0x44   : > { %p3806_p10 = pnand %p3804_p9, %p4277_p7 }
  0x46   : > { %p3807_p11 = pneg %p3806_p10 }
  0x48   : > { %p3812_p13 = pnand %p3810_p12, %p3807_p11 }
  0x4a   : > { %3815 = shalt.err (!%p3812_p13)
}
  0x4b   : > { %s3816_s2 = scalar_lea.vmem %s4265_s30, 1024  ;;  %p3824_p6 = scmp.lt.s32.totalorder %s4265_s30, %s4265_s30 }
  0x4c   : > { %p3817_p0 = scmp.ne.s32.totalorder %s4265_s30, %s3816_s2  ;;  %p3825_p8 = scmp.lt.s32.totalorder %s3816_s2, %s3816_s2 }
  0x4e   : > { %p3819_p2 = pnand %p3817_p0, %p4277_p7  ;;  %p3826_p9 = por %p3825_p8, %p3824_p6 }
  0x50   : > { %p3820_p4 = pneg %p3819_p2 }
  0x52   : > { %p3827_p10 = pnand %p3826_p9, %p3820_p4 }
  0x54   : > { %3830 = shalt.err (!%p3827_p10)
}
  0x55   : > { %3603 = dma.hbm_to_vmem [thread:$0]  (!%p4261_p5), %s4929_s18, 1024, %s4265_s30, [#allocation8], %s4905_s22, %s4905_s22, %s4085_s20  }
  0x56   : > { %s3831_s23 = scalar_lea.hbm %s4883_s11, 1024 }
  0x57   : > { %p3832_p11 = scmp.ne.s32.totalorder %s4883_s11, %s3831_s23  ;;  %p3838_p0 = scmp.lt.u32.totalorder %s3831_s23, %s4883_s11 }
  0x59   : > { %p3834_p12 = pnand %p3832_p11, %p4277_p7 }
  0x5b   : > { %p3835_p13 = pneg %p3834_p12 }
  0x5d   : > { %p3840_p2 = pnand %p3838_p0, %p3835_p13 }
  0x5f   : > { %3843 = shalt.err (!%p3840_p2)
}
  0x60   : > { %s3844_s30 = scalar_lea.vmem %s4267_s8, 1024  ;;  %p3852_p9 = scmp.lt.s32.totalorder %s4267_s8, %s4267_s8 }
  0x61   : > { %p3845_p4 = scmp.ne.s32.totalorder %s4267_s8, %s3844_s30  ;;  %p3853_p10 = scmp.lt.s32.totalorder %s3844_s30, %s3844_s30 }
  0x63   : > { %p3847_p6 = pnand %p3845_p4, %p4277_p7  ;;  %p3854_p11 = por %p3853_p10, %p3852_p9 }
  0x65   : > { %p3848_p8 = pneg %p3847_p6 }
  0x67   : > { %p3855_p12 = pnand %p3854_p11, %p3848_p8 }
  0x69   : > { %3858 = shalt.err (!%p3855_p12)
}
  0x6a   : > { %3609 = dma.hbm_to_vmem [thread:$0]  (!%p4261_p5), %s4883_s11, 1024, %s4267_s8, [#allocation11], %s4905_s22, %s4905_s22, %s4085_s20  }
  0x6b   : > { %s4086_s14 = smov [#allocation13]   ;;  %s4087_s16 = smov [#allocation6]  }
  0x6c   : > { %s709_s15 = sshll.u32 %s4086_s14, 4  ;;  %s623_s23 = sshll.u32 %s4087_s16, 4  ;;  %s710_s15 = int_to_ptr.vmem [resolvable:$true] %s709_s15  ;;  %s624_s23 = int_to_ptr.vmem [resolvable:$true] %s623_s23 }
  0x6d   : > { %s3859_s25 = scalar_lea.hbm %s4889_s17, 1024 }
  0x6e   : > { %p3860_p13 = scmp.ne.s32.totalorder %s4889_s17, %s3859_s25  ;;  %p3866_p4 = scmp.lt.u32.totalorder %s3859_s25, %s4889_s17 }
  0x70   : > { %p3862_p0 = pnand %p3860_p13, %p4277_p7 }
  0x72   : > { %p3863_p2 = pneg %p3862_p0 }
  0x74   : > { %p3868_p6 = pnand %p3866_p4, %p3863_p2 }
  0x76   : > { %3871 = shalt.err (!%p3868_p6)
}
  0x77   : > { %s3872_s8 = scalar_lea.vmem %s710_s15, 1024  ;;  %p3880_p11 = scmp.lt.s32.totalorder %s710_s15, %s710_s15 }
  0x78   : > { %p3873_p8 = scmp.ne.s32.totalorder %s710_s15, %s3872_s8  ;;  %p3881_p12 = scmp.lt.s32.totalorder %s3872_s8, %s3872_s8 }
  0x7a   : > { %p3875_p9 = pnand %p3873_p8, %p4277_p7  ;;  %p3882_p1 = por %p3881_p12, %p3880_p11 }
  0x7c   : > { %p3876_p10 = pneg %p3875_p9 }
  0x7e   : > { %p3883_p3 = pnand %p3882_p1, %p3876_p10 }
  0x80   : > { %3886 = shalt.err (!%p3883_p3)
}
  0x81   : > { %3615 = dma.hbm_to_vmem [thread:$0]  (!%p4261_p5), %s4889_s17, 1024, %s710_s15, [#allocation14], %s4905_s22, %s4905_s22, %s4085_s20  }
  0x82   : > { %s4930_s4 = sld [smem:[#allocation25_spill]] }
  0x88   : > { %s3887_s1 = scalar_lea.hbm %s4930_s4, 16 }
  0x89   : > { %p3888_p1 = scmp.ne.s32.totalorder %s4930_s4, %s3887_s1  ;;  %p3894_p0 = scmp.lt.u32.totalorder %s3887_s1, %s4930_s4 }
  0x8b   : > { %p3890_p3 = pnand %p3888_p1, %p4277_p7 }
  0x8d   : > { %p3891_p13 = pneg %p3890_p3 }
  0x8f   : > { %p3896_p2 = pnand %p3894_p0, %p3891_p13 }
  0x91   : > { %3899 = shalt.err (!%p3896_p2)
}
  0x92   : > { %s3900_s8 = scalar_lea.vmem %s624_s23, 16  ;;  %s3907_s15 = scalar_lea.vmem %s624_s23, 32 }
  0x93   : > { %p3901_p4 = scmp.ne.s32.totalorder %s624_s23, %s3900_s8  ;;  %p3908_p9 = scmp.lt.s32.totalorder %s624_s23, %s624_s23 }
  0x94   : > { %p3909_p10 = scmp.lt.s32.totalorder %s3907_s15, %s3900_s8 }
  0x95   : > { %p3903_p6 = pnand %p3901_p4, %p4277_p7 }
  0x96   : > { %p3910_p11 = por %p3909_p10, %p3908_p9 }
  0x97   : > { %p3904_p8 = pneg %p3903_p6 }
  0x99   : > { %p3911_p12 = pnand %p3910_p11, %p3904_p8 }
  0x9b   : > { %3914 = shalt.err (!%p3911_p12)
}
  0x9c   : > { %3600 = dma.hbm_to_vmem [thread:$0]  (!%p4261_p5), %s4930_s4, 16, %s624_s23, [#allocation5]  }
  0x9d   : > { %s4088_s14 = smov [#allocation9]   ;;  %s4089_s1 = smov [#allocation12]  }
  0x9e   : > { %s655_s16 = sshll.u32 %s4088_s14, 4  ;;  %s687_s25 = sshll.u32 %s4089_s1, 4  ;;  %s656_s16 = int_to_ptr.vmem [resolvable:$true] %s655_s16  ;;  %s688_s25 = int_to_ptr.vmem [resolvable:$true] %s687_s25 }
  0x9f   : > { %s3915_s2 = scalar_lea.hbm %s4881_s9, 1024 }
  0xa0   : > { %p3916_p1 = scmp.ne.s32.totalorder %s4881_s9, %s3915_s2  ;;  %p3922_p0 = scmp.lt.u32.totalorder %s3915_s2, %s4881_s9 }
  0xa2   : > { %p3918_p3 = pnand %p3916_p1, %p4277_p7 }
  0xa4   : > { %p3919_p13 = pneg %p3918_p3 }
  0xa6   : > { %p3924_p2 = pnand %p3922_p0, %p3919_p13 }
  0xa8   : > { %3927 = shalt.err (!%p3924_p2)
}
  0xa9   : > { %s3928_s23 = scalar_lea.vmem %s656_s16, 1024  ;;  %p3936_p9 = scmp.lt.s32.totalorder %s656_s16, %s656_s16 }
  0xaa   : > { %p3929_p4 = scmp.ne.s32.totalorder %s656_s16, %s3928_s23  ;;  %p3937_p10 = scmp.lt.s32.totalorder %s3928_s23, %s3928_s23 }
  0xac   : > { %p3931_p6 = pnand %p3929_p4, %p4277_p7  ;;  %p3938_p11 = por %p3937_p10, %p3936_p9 }
  0xae   : > { %p3932_p8 = pneg %p3931_p6 }
  0xb0   : > { %p3939_p12 = pnand %p3938_p11, %p3932_p8 }
  0xb2   : > { %3942 = shalt.err (!%p3939_p12)
}
  0xb3   : > { %s4931_s12 = smov 64   ;;  %s3943_s30 = scalar_lea.hbm %s4885_s13, 1024 }
  0xb4   : > { %3606 = dma.hbm_to_vmem [thread:$0]  (!%p4261_p5), %s4881_s9, 1024, %s656_s16, [#allocation8], %s4931_s12, %s4931_s12, %s4085_s20  }
  0xb5   : > { %p3944_p1 = scmp.ne.s32.totalorder %s4885_s13, %s3943_s30  ;;  %p3950_p0 = scmp.lt.u32.totalorder %s3943_s30, %s4885_s13 }
  0xb7   : > { %p3946_p3 = pnand %p3944_p1, %p4277_p7 }
  0xb9   : > { %p3947_p13 = pneg %p3946_p3 }
  0xbb   : > { %p3952_p2 = pnand %p3950_p0, %p3947_p13 }
  0xbd   : > { %3955 = shalt.err (!%p3952_p2)
}
  0xbe   : > { %s3956_s23 = scalar_lea.vmem %s688_s25, 1024  ;;  %p3964_p9 = scmp.lt.s32.totalorder %s688_s25, %s688_s25 }
  0xbf   : > { %p3957_p4 = scmp.ne.s32.totalorder %s688_s25, %s3956_s23  ;;  %p3965_p10 = scmp.lt.s32.totalorder %s3956_s23, %s3956_s23 }
  0xc1   : > { %p3959_p6 = pnand %p3957_p4, %p4277_p7  ;;  %p3966_p11 = por %p3965_p10, %p3964_p9 }
  0xc3   : > { %p3960_p8 = pneg %p3959_p6 }
  0xc5   : > { %p3967_p12 = pnand %p3966_p11, %p3960_p8 }
  0xc7   : > { %3970 = shalt.err (!%p3967_p12)
}
  0xc8   : > { %3612 = dma.hbm_to_vmem [thread:$0]  (!%p4261_p5), %s4885_s13, 1024, %s688_s25, [#allocation11], %s4931_s12, %s4931_s12, %s4085_s20  }
  0xc9   : > { %s4090_s14 = smov [#allocation15]   ;;  %s3971_s2 = scalar_lea.hbm %s4891_s19, 1024 }
  0xca   : > { %s725_s1 = sshll.u32 %s4090_s14, 4  ;;  %p3972_p1 = scmp.ne.s32.totalorder %s4891_s19, %s3971_s2  ;;  %s726_s1 = int_to_ptr.vmem [resolvable:$true] %s725_s1 }
  0xcb   : > { %p3978_p0 = scmp.lt.u32.totalorder %s3971_s2, %s4891_s19 }
  0xcc   : > { %p3974_p3 = pnand %p3972_p1, %p4277_p7 }
  0xce   : > { %p3975_p13 = pneg %p3974_p3 }
  0xd0   : > { %p3980_p2 = pnand %p3978_p0, %p3975_p13 }
  0xd2   : > { %3983 = shalt.err (!%p3980_p2)
}
  0xd3   : > { %s3984_s25 = scalar_lea.vmem %s726_s1, 1024  ;;  %p3992_p9 = scmp.lt.s32.totalorder %s726_s1, %s726_s1 }
  0xd4   : > { %p3985_p4 = scmp.ne.s32.totalorder %s726_s1, %s3984_s25  ;;  %p3993_p10 = scmp.lt.s32.totalorder %s3984_s25, %s3984_s25 }
  0xd6   : > { %p3987_p6 = pnand %p3985_p4, %p4277_p7  ;;  %p3994_p11 = por %p3993_p10, %p3992_p9 }
  0xd8   : > { %p3988_p8 = pneg %p3987_p6 }
  0xda   : > { %p3995_p12 = pnand %p3994_p11, %p3988_p8 }
  0xdc   : > { %3998 = shalt.err (!%p3995_p12)
}
  0xdd   : > { %3618 = dma.hbm_to_vmem [thread:$0]  (!%p4261_p5), %s4891_s19, 1024, %s726_s1, [#allocation14], %s4931_s12, %s4931_s12, %s4085_s20  }
  0xde   : > { %s4456_s3 = sadd.s32 1, %s4079_s28   ;;  %s75_s7 = sadd.s32 1, %s4075_s27 }
  0xdf   : > { %s72_s14 = ssub.s32 %s4079_s28, %s4456_s3  ;;  %p82_p7 = scmp.ne.s32.totalorder %s4075_s27, %s4071_s26 }
  0xe0   : > { %p73_p1 = scmp.eq.s32.totalorder %s72_s14, 0  ;;  %p83_p3 = scmp.eq.s32.totalorder %s4079_s28, 0 }
  0xe1   : > { %p88_p13 = scmp.ne.s32.totalorder %s4071_s26, %s4067_s5  ;;  %p3631_p0 = scmp.lt.s32.totalorder %s4079_s28, 2 }
  0xe2   : > { %s4468_s21 = scalar_select %p73_p1, %s4075_s27, %s75_s7  }
  0xe3   : > { %p84_p2 = por %p83_p3, %p82_p7  ;;  %p4932_p4 = scmp.eq.s32.totalorder %s4246_s29, 0 }
  0xe4   : > { %s755_s2 = sand.u32 1, %s4075_s27   ;;  %s3150_s20 = sshll.u32 %s4079_s28, 7 }
  0xe5   : > { %p4472_p6 = por %p4932_p4, %p88_p13  ;;  %s3149_s12 = sshll.u32 %s755_s2, 3 }
  0xe6   : > { %s4934_s15 = sld [smem:[#allocation22_spill]]  ;;  %s759_s5 = scalar_lea.vmem [#allocation2], %s3149_s12 }
  0xe7   : > { %s766_s23 = sshll.u32 %s759_s5, 4  ;;  %p4483_p5 = pnand %p3631_p0, %p84_p2  ;;  %s4487_s23 = int_to_ptr.vmem [resolvable:$true] %s766_s23 }
  0xe8   : > { %s756_s28 = scalar_lea.sflag [#allocation3], %s755_s2 }
  0xe9   : > { %p4001_p9 = pneg %p4483_p5 }
  0xec   : > { %s4481_s6 = scalar_lea.hbm %s4934_s15, %s3150_s20  ;;  %s4004_s14 = scalar_lea.hbm %s4934_s15, 256 }
  0xed   : > { %s3999_s16 = scalar_lea.hbm %s4481_s6, 128  ;;  %p4005_p12 = scmp.lt.u32.totalorder %s4481_s6, %s4934_s15 }
  0xee   : > { %p4000_p8 = scmp.ne.s32.totalorder %s4481_s6, %s3999_s16  ;;  %p4006_p7 = scmp.lt.u32.totalorder %s4004_s14, %s3999_s16 }
  0xef   : > { %p4008_p3 = scmp.lt.u32.totalorder %s3999_s16, %s4481_s6 }
  0xf0   : > { %p4002_p10 = pnand %p4001_p9, %p4000_p8  ;;  %p4007_p1 = por %p4006_p7, %p4005_p12 }
  0xf2   : > { %p4003_p11 = pneg %p4002_p10  ;;  %p4009_p13 = por %p4008_p3, %p4007_p1 }
  0xf4   : > { %p4010_p0 = pnand %p4009_p13, %p4003_p11 }
  0xf6   : > { %4013 = shalt.err (!%p4010_p0)
}
  0xf7   : > { %s4014_s2 = scalar_lea.vmem %s4487_s23, 128  ;;  %s4091_s1 = smov [#allocation2]  }
  0xf8   : > { %p4015_p2 = scmp.ne.s32.totalorder %s4487_s23, %s4014_s2  ;;  %s4019_s8 = sshll.u32 %s4091_s1, 4  ;;  %s4020_s8 = int_to_ptr.vmem [resolvable:$false] %s4019_s8 }
  0xf9   : > { %s4021_s5 = scalar_lea.vmem %s4020_s8, 256  ;;  %p4022_p10 = scmp.lt.s32.totalorder %s4487_s23, %s4020_s8 }
  0xfa   : > { %p4017_p4 = pnand %p4015_p2, %p4001_p9  ;;  %p4023_p12 = scmp.lt.s32.totalorder %s4021_s5, %s4014_s2 }
  0xfc   : > { %p4018_p8 = pneg %p4017_p4  ;;  %p4024_p7 = por %p4023_p12, %p4022_p10 }
  0xfe   : > { %p4025_p1 = pnand %p4024_p7, %p4018_p8 }
 0x100   : > { %4028 = shalt.err (!%p4025_p1)
}
 0x101   : > { %3622 = dma.hbm_to_vmem [thread:$0]  (!%p4483_p5), %s4481_s6, 128, %s4487_s23, %s756_s28  }
 0x102   : > { %p4936_p11 = scmp.ne.s32.totalorder %s4925_s0, 0 }
 0x103   : > { %s784_s16 = sand.u32 (!%p4936_p11), 1, %s4071_s26  }
 0x104   : > { %782 = sbr.rel (%p4936_p11) target bundleno = 3144 (0xc48), region = 112  ;;  %s3152_s22 = sshll.u32 (!%p4936_p11), %s784_s16, 3 }
 0x105   : > { %s785_s7 = scalar_lea.sflag (!%p4936_p11), [#allocation3], %s784_s16  ;;  %s788_s14 = scalar_lea.vmem (!%p4936_p11), [#allocation2], %s3152_s22 }
 0x10b   : > { %4046 = dma.done.wait (%p4472_p6), %s785_s7, 128  }
 0x10c   : > { %4048 = vsyncadd (%p4472_p6), %s785_s7, 4294967168  ;;  %p4937_p9 = scmp.eq.s32.totalorder %s4246_s29, 0 }
 0x10e   : > { %4050 = dma.done.wait (%p4937_p9), [#allocation5], 1040   ;;  %p4938_p3 = pmov %p4937_p9 }
 0x110   : > { %4052 = vsyncadd (%p4938_p3), [#allocation5], 4294966256  ;;  %p4939_p5 = pmov %p4938_p3 }
 0x111   : > { %p4940_p13 = pmov %p4938_p3 }
 0x112   : > { %4054 = dma.done.wait (%p4939_p5), [#allocation8], 2048  }
 0x113   : > { %4056 = vsyncadd (%p4940_p13), [#allocation8], 4294965248  ;;  %p4941_p0 = pmov %p4938_p3 }
 0x115   : > { %4058 = dma.done.wait (%p4941_p0), [#allocation11], 2048   ;;  %p4942_p2 = pmov %p4941_p0 }
 0x116   : > { %p4943_p6 = pmov %p4941_p0 }
 0x117   : > { %4060 = vsyncadd (%p4942_p2), [#allocation11], 4294965248 }
 0x118   : > { %4062 = dma.done.wait (%p4943_p6), [#allocation14], 2048   ;;  %p4944_p4 = pmov %p4941_p0 }
 0x119   : > { %p896_p8 = scmp.lt.s32.totalorder %s4246_s29, 1  ;;  %v4092_v0 = vmov 0   ;;  %v4093_v1 = vmov 0.0   ;;  %s4945_s23 = sld [smem:[#allocation23_spill]]  ;;  %v915_v3 = vld [vmem:[%s788_s14] sm:$0xff]  ;;  %vm4094_vm0 = vmmov 0   ;;  %v917_v12 = vlaneseq }
 0x11a   : > { %4064 = vsyncadd (%p4944_p4), [#allocation14], 4294965248  ;;  %3690 = vset.pattern.permute.xlu0 %v4092_v0  ;;  %3347 = vmatprep.subr.mxu0 %v4093_v1  ;;  %v3691_v4 = vld [vmem:[#allocation4] sm:$0xff]   ;;  %v3693_v5 = vld [vmem:[#allocation4 + $0x8] sm:$0xff]   ;;  %vm925_vm1 = vcmask 64512   ;;  %s4946_s12 = sld [smem:[#allocation26_spill]] }
 0x11b   : > { %s4964_s29 = smov (!%p896_p8, %s4246_s29), 1  ;;  %3352 = vmatprep.subr.bf16.mxu1 %v4093_v1  ;;  %3348 = vmatpush3.msra.mxu0 %v915_v3  ;;  %v3695_v6 = vld [vmem:[#allocation4 + $0x10] sm:$0xff]   ;;  %v3697_v7 = vld [vmem:[#allocation4 + $0x18] sm:$0xff]   ;;  %v3699_v8 = vld [vmem:[#allocation4 + $0x20] sm:$0xff]   ;;  %v918_v13 = vand.u32 127, %v917_v12  ;;  %s4947_s2 = sld [smem:[#allocation21_spill]] }
 0x11c   : > { %s3161_s0 = sshll.u32 %s4964_s29, 3  ;;  %3349 = vmatprep.mubr.msk.f32.mxu0 %vm4094_vm0, %v4093_v1  ;;  %3372 = vmatprep.subr.bf16.mxu0 %v4093_v1  ;;  %v3701_v9 = vld [vmem:[#allocation4 + $0x28] sm:$0xff]   ;;  %v3703_v10 = vld [vmem:[#allocation4 + $0x30] sm:$0xff]   ;;  %v3705_v11 = vld [vmem:[#allocation4 + $0x38] sm:$0xff]   ;;  %s4948_s22 = sld [smem:[#allocation27_spill]]  ;;  %vm1974_vm3 = vcmask 261120  }
 0x11d   : > { %3368 = vmatprep.mubr.msk.bf16.mxu1 %vm4094_vm0, %v4093_v1  ;;  %3353 = vmatpush3.bf16.msra.mxu1 %v3691_v4  ;;  %v3707_v26 = vld [vmem:[#allocation7] sm:$0xff]   ;;  %v3709_v27 = vld [vmem:[#allocation7 + $0x8] sm:$0xff]   ;;  %v3711_v28 = vld [vmem:[#allocation7 + $0x10] sm:$0xff]   ;;  %s3163_s7 = sshll.u32 %s4964_s29, 2  ;;  %s4096_s8 = smov 96   ;;  %vm2159_vm4 = vcmask 46080  }
 0x11e   : > { %3354 = vmatprep.subr.bf16.mxu1 %v4093_v1  ;;  %v3713_v29 = vld [vmem:[#allocation7 + $0x18] sm:$0xff]   ;;  %v3715_v30 = vld [vmem:[#allocation7 + $0x20] sm:$0xff]   ;;  %v3717_v31 = vld [vmem:[#allocation7 + $0x28] sm:$0xff]   ;;  %s911_s6 = scalar_lea.vmem %s4896_s24, %s3163_s7  ;;  %s4097_s5 = smov 32   ;;  %vm2212_vm5 = vcmask 1042432   ;;  %vm2208_vm6 = vcmask 48128  }
 0x11f   : > { %s903_s25 = scalar_lea.vmem %s4945_s23, %s3161_s0  ;;  %v3719_v32 = vld [vmem:[#allocation7 + $0x30] sm:$0xff]   ;;  %v3708_v34 = vld [vmem:[#allocation9] sm:$0xff]   ;;  %v3710_v37 = vld [vmem:[#allocation9 + $0x8] sm:$0xff]   ;;  %vm2532_vm7 = vcmask 523264   ;;  %vm2534_vm8 = vcmask 785408   ;;  %vm2651_vm9 = vcmask 1045504  }
 0x120   : > { %v916_v2 = vld [vmem:[%s903_s25] sm:$0x3f]  ;;  %v3694_v17 = vld [vmem:[%s4946_s12 + $0x8] sm:$0xff]   ;;  %v3696_v18 = vld [vmem:[%s4946_s12 + $0x10] sm:$0xff]   ;;  %s4952_s28 = sld [smem:[#allocation32_spill]]  ;;  %s4955_s14 = sld [smem:[#allocation35_spill]] }
 0x121   : > { %920 = vperm.xlu0 %3690, %v916_v2   ;;  %3355 = vmatpush3.bf16.msra.mxu1 %v3693_v5  ;;  %v3692_v15 = vld [vmem:[%s4946_s12] sm:$0xff]   ;;  %v3698_v19 = vld [vmem:[%s4946_s12 + $0x18] sm:$0xff]   ;;  %v3702_v21 = vld [vmem:[%s4946_s12 + $0x28] sm:$0xff]   ;;  %s899_s1 = scalar_lea.vmem %s4947_s2, %s3161_s0  ;;  %s4949_s2 = sld [smem:[#allocation29_spill]] }
 0x122   : > { %3356 = vmatprep.subr.bf16.mxu1 %v4093_v1  ;;  %v3700_v20 = vld [vmem:[%s4946_s12 + $0x20] sm:$0xff]   ;;  %v3704_v22 = vld [vmem:[%s4946_s12 + $0x30] sm:$0xff]   ;;  %v3706_v25 = vld [vmem:[%s4946_s12 + $0x38] sm:$0xff]   ;;  %s4954_s0 = sld [smem:[#allocation34_spill]]  ;;  %s4956_s23 = sld [smem:[#allocation36_spill]] }
 0x123   : > { %v913_v23 = vld [vmem:[%s899_s1] sm:$0x3f]  ;;  %v3714_v39 = vld [vmem:[#allocation9 + $0x18] sm:$0xff]   ;;  %v3716_v40 = vld [vmem:[#allocation9 + $0x20] sm:$0xff]   ;;  %s4095_s1 = smov 64   ;;  %s4957_s20 = sld [smem:[#allocation37_spill]] }
 0x124   : > { %v914_v24 = vpack.c.bf16 %v913_v23, %v913_v23  ;;  %v3712_v38 = vld [vmem:[#allocation9 + $0x10] sm:$0xff]   ;;  %v3718_v41 = vld [vmem:[#allocation9 + $0x28] sm:$0xff]   ;;  %v3721_v47 = vld [vmem:[#allocation7 + $0x38] sm:$0xff]  }
 0x125   : > { %3357 = vmatpush3.bf16.msra.mxu1 %v3695_v6  ;;  %v3720_v44 = vld [vmem:[#allocation9 + $0x30] sm:$0xff]   ;;  %v3722_v48 = vld [vmem:[#allocation9 + $0x38] sm:$0xff]   ;;  %v3176_v50 = vld [vmem:[%s4948_s22] ss:$0 sm:$0xff]  ;;  %s4950_s22 = sld [smem:[#allocation30_spill]] }
 0x126   : > { %3358 = vmatprep.subr.bf16.mxu1 %v4093_v1  ;;  %v3167_v49 = vld [vmem:[#allocation6] ss:$0 sm:$0xff]  ;;  %v3723_v59 = vld [vmem:[#allocation10] sm:$0xff]   ;;  %v3724_v61 = vld [vmem:[#allocation10 + $0x8] sm:$0xff]  }
 0x127   : > { %v3725_v62 = vld [vmem:[#allocation10 + $0x10] sm:$0xff]   ;;  %v3726_v63 = vld [vmem:[#allocation10 + $0x18] sm:$0xff]   ;;  %v3727_v0 = vld [vmem:[#allocation10 + $0x20] sm:$0xff]  }
 0x128   : > { %v3728_v2 = vld [vmem:[#allocation10 + $0x28] sm:$0xff]   ;;  %v3729_v3 = vld [vmem:[#allocation10 + $0x30] sm:$0xff]   ;;  %v3730_v4 = vld [vmem:[#allocation10 + $0x38] sm:$0xff]  }
 0x129   : > { %3359 = vmatpush3.bf16.msra.mxu1 %v3697_v7  ;;  %v3194_v5 = vld [vmem:[%s4882_s10] ss:$0 sm:$0xff] }
 0x12a   : > { %3360 = vmatprep.subr.bf16.mxu1 %v4093_v1 }
 0x12d   : > { %3361 = vmatpush3.bf16.msra.mxu1 %v3699_v8 }
 0x12e   : > { %3362 = vmatprep.subr.bf16.mxu1 %v4093_v1 }
 0x131   : > { %3363 = vmatpush3.bf16.msra.mxu1 %v3701_v9 }
 0x132   : > { %3364 = vmatprep.subr.bf16.mxu1 %v4093_v1 }
 0x135   : > { %3365 = vmatpush3.bf16.msra.mxu1 %v3703_v10 }
 0x136   : > { %3366 = vmatprep.subr.bf16.mxu1 %v4093_v1 }
 0x139   : > { %3367 = vmatpush3.bf16.msra.mxu1 %v3705_v11  ;;  %v3185_v11 = vld [vmem:[%s4949_s2] ss:$0 sm:$0xff] }
 0x13a   : > { %3392 = vmatprep.subr.bf16.mxu1 %v4093_v1 }
 0x13c   : > { %3369 = vmatmul.mubr.bf16.vlgmr.msra.gmra.mrb[0].mxu1 %v914_v24  ;;  %v4099_v24 = vmov 1934713408  }
 0x13d   : > { %3408 = vmatprep.mubr.msk.bf16.mxu1 %vm4094_vm0, %v4093_v1  ;;  %3393 = vmatpush3.bf16.msra.mxu1 %v3707_v26 }
 0x13e   : > { %3394 = vmatprep.subr.bf16.mxu1 %v4093_v1 }
 0x141   : > { %3395 = vmatpush3.bf16.msra.mxu1 %v3709_v27  ;;  %v1573_v27 = vshrl.u32 %v917_v12, 7 }
 0x142   : > { %3396 = vmatprep.subr.bf16.mxu1 %v4093_v1 }
 0x145   : > { %3397 = vmatpush3.bf16.msra.mxu1 %v3711_v28 }
 0x146   : > { %3398 = vmatprep.subr.bf16.mxu1 %v4093_v1 }
 0x149   : > { %3399 = vmatpush3.bf16.msra.mxu1 %v3713_v29 }
 0x14a   : > { %3400 = vmatprep.subr.bf16.mxu1 %v4093_v1 }
 0x14d   : > { %3401 = vmatpush3.bf16.msra.mxu1 %v3715_v30 }
 0x14e   : > { %3402 = vmatprep.subr.bf16.mxu1 %v4093_v1 }
 0x151   : > { %3403 = vmatpush3.bf16.msra.mxu1 %v3717_v31 }
 0x152   : > { %3404 = vmatprep.subr.bf16.mxu1 %v4093_v1 }
 0x155   : > { %3405 = vmatpush3.bf16.msra.mxu1 %v3719_v32 }
 0x156   : > { %3406 = vmatprep.subr.bf16.mxu1 %v4093_v1 }
 0x159   : > { %3407 = vmatpush3.bf16.msra.mxu1 %v3721_v47 }
 0x15a   : > { %3432 = vmatprep.subr.bf16.mxu1 %v4093_v1 }
 0x1a0   : > { %v921_v14 = vpop.permute.xlu0 %920 }
 0x1a1   : > { %vm922_vm2 = vcmp.eq.s32.totalorder %v918_v13, %v921_v14 }
 0x1a2   : > { %v3165_v16 = vsel %vm922_vm2, 1.0, %v4093_v1 }
 0x1a3   : > { %3350 = vmatmul.mubr.msk.f32.vlgmr.msra.gmra.mrb[0].mxu0 %vm925_vm1, %v3165_v16 }
 0x1a4   : > { %3373 = vmatpush3.bf16.msra.mxu0 %v3692_v15  ;;  %3388 = vmatprep.mubr.msk.bf16.mxu0 %vm4094_vm0, %v4093_v1 }
 0x1a5   : > { %3374 = vmatprep.subr.bf16.mxu0 %v4093_v1 }
 0x1a8   : > { %3375 = vmatpush3.bf16.msra.mxu0 %v3694_v17 }
 0x1a9   : > { %3376 = vmatprep.subr.bf16.mxu0 %v4093_v1 }
 0x1ac   : > { %3377 = vmatpush3.bf16.msra.mxu0 %v3696_v18 }
 0x1ad   : > { %3378 = vmatprep.subr.bf16.mxu0 %v4093_v1 }
 0x1b0   : > { %3379 = vmatpush3.bf16.msra.mxu0 %v3698_v19 }
 0x1b1   : > { %3380 = vmatprep.subr.bf16.mxu0 %v4093_v1 }
 0x1b4   : > { %3381 = vmatpush3.bf16.msra.mxu0 %v3700_v20 }
 0x1b5   : > { %3382 = vmatprep.subr.bf16.mxu0 %v4093_v1 }
 0x1b8   : > { %3383 = vmatpush3.bf16.msra.mxu0 %v3702_v21 }
 0x1b9   : > { %3384 = vmatprep.subr.bf16.mxu0 %v4093_v1 }
 0x1bc   : > { %3385 = vmatpush3.bf16.msra.mxu0 %v3704_v22  ;;  %v4098_v22 = vmov 1983009808  }
 0x1bd   : > { %3386 = vmatprep.subr.bf16.mxu0 %v4093_v1  ;;  %v1570_v23 = vunpack.c.l.s4 %v4098_v22 }
 0x1bf   : > { %v1571_v26 = vunpack.c.0.s8 %v1570_v23 }
 0x1c0   : > { %3387 = vmatpush3.bf16.msra.mxu0 %v3706_v25  ;;  %v1602_v25 = vunpack.c.l.s4 %v4099_v24 }
 0x1c1   : > { %3412 = vmatprep.subr.bf16.mxu0 %v4093_v1  ;;  %v4665_v31 = vsub.s32 %v1571_v26, %v1573_v27 }
 0x1c2   : > { %v1603_v30 = vunpack.c.0.s8 %v1602_v25 }
 0x20f   : > { %v1104_v42 = vpop.f32.mrb[0].mxu1 }
 0x210   : > { %v3370_v43 = vpop.f32.mrb[1].mxu1  ;;  %v1105_v51 = vadd.f32 %v3167_v49, %v1104_v42 }
 0x211   : > { %v1107_v45 = vpop.f32.mrb[2].mxu1 }
 0x212   : > { %v3371_v46 = vpop.f32.mrb[3].mxu1 }
 0x276   : > { %v995_v33 = vpop.f32.mrb[0].mxu0 }
 0x277   : > { %v1110_v35 = vpack.c.bf16 %v995_v33, %v995_v33  ;;  %v3351_v36 = vpop.f32.mrb[1].mxu0 }
 0x279   : > { %3389 = vmatmul.mubr.bf16.vlgmr.msra.gmra.mrb[4].mxu0 %v1110_v35 }
 0x27a   : > { %3413 = vmatpush3.bf16.msra.mxu0 %v3708_v34  ;;  %3428 = vmatprep.mubr.msk.bf16.mxu0 %vm4094_vm0, %v4093_v1 }
 0x27b   : > { %3414 = vmatprep.subr.bf16.mxu0 %v4093_v1 }
 0x27e   : > { %3415 = vmatpush3.bf16.msra.mxu0 %v3710_v37 }
 0x27f   : > { %3416 = vmatprep.subr.bf16.mxu0 %v4093_v1 }
 0x282   : > { %3417 = vmatpush3.bf16.msra.mxu0 %v3712_v38  ;;  %v4667_v38 = vsub.s32 %v1603_v30, %v1573_v27 }
 0x283   : > { %3418 = vmatprep.subr.bf16.mxu0 %v4093_v1 }
 0x286   : > { %3419 = vmatpush3.bf16.msra.mxu0 %v3714_v39 }
 0x287   : > { %3420 = vmatprep.subr.bf16.mxu0 %v4093_v1 }
 0x28a   : > { %3421 = vmatpush3.bf16.msra.mxu0 %v3716_v40 }
 0x28b   : > { %3422 = vmatprep.subr.bf16.mxu0 %v4093_v1 }
 0x28e   : > { %3423 = vmatpush3.bf16.msra.mxu0 %v3718_v41 }
 0x28f   : > { %3424 = vmatprep.subr.bf16.mxu0 %v4093_v1 }
 0x292   : > { %3425 = vmatpush3.bf16.msra.mxu0 %v3720_v44 }
 0x293   : > { %3426 = vmatprep.subr.bf16.mxu0 %v4093_v1 }
 0x296   : > { %3427 = vmatpush3.bf16.msra.mxu0 %v3722_v48 }
 0x297   : > { %3452 = vmatprep.subr.bf16.mxu0 %v4093_v1 }
 0x34c   : > { %v1216_v52 = vpop.f32.mrb[4].mxu0 }
 0x34d   : > { %v1217_v53 = vadd.f32 %v3176_v50, %v1216_v52  ;;  %v3390_v54 = vpop.f32.mrb[5].mxu0 }
 0x34e   : > { %v1219_v55 = vpop.f32.mrb[6].mxu0 }
 0x34f   : > { %v4632_v56 = vadd.f32 %v1217_v53, %v1105_v51  ;;  %v2940_v57 = vpack.c.bf16 %v1217_v53, %v1217_v53  ;;  %v3391_v58 = vpop.f32.mrb[7].mxu0 }
 0x351   : > { %v1223_v60 = vpack.c.bf16 %v4632_v56, %v4632_v56  ;;  %2941 = vst [vmem:[%s911_s6] sm:$0x7] %v2940_v57  ;;  %s4951_s6 = sld [smem:[#allocation31_spill]] }
 0x353   : > { %3409 = vmatmul.mubr.bf16.vlgmr.msra.gmra.mrb[4].mxu1 %v1223_v60  ;;  %3429 = vmatmul.mubr.bf16.vlgmr.msra.gmra.mrb[8].mxu0 %v1223_v60 }
 0x354   : > { %3433 = vmatpush3.bf16.msra.mxu1 %v3723_v59  ;;  %3448 = vmatprep.mubr.msk.bf16.mxu1 %vm4094_vm0, %v4093_v1 }
 0x355   : > { %3434 = vmatprep.subr.bf16.mxu1 %v4093_v1  ;;  %3454 = vmatprep.mubr.msk.bf16.mxu0 %vm4094_vm0, %v4093_v1 }
 0x358   : > { %3435 = vmatpush3.bf16.msra.mxu1 %v3724_v61 }
 0x359   : > { %3436 = vmatprep.subr.bf16.mxu1 %v4093_v1 }
 0x35c   : > { %3437 = vmatpush3.bf16.msra.mxu1 %v3725_v62 }
 0x35d   : > { %3438 = vmatprep.subr.bf16.mxu1 %v4093_v1 }
 0x360   : > { %3439 = vmatpush3.bf16.msra.mxu1 %v3726_v63 }
 0x361   : > { %3440 = vmatprep.subr.bf16.mxu1 %v4093_v1 }
 0x364   : > { %3441 = vmatpush3.bf16.msra.mxu1 %v3727_v0 }
 0x365   : > { %3442 = vmatprep.subr.bf16.mxu1 %v4093_v1 }
 0x368   : > { %3443 = vmatpush3.bf16.msra.mxu1 %v3728_v2 }
 0x369   : > { %3444 = vmatprep.subr.bf16.mxu1 %v4093_v1 }
 0x36c   : > { %3445 = vmatpush3.bf16.msra.mxu1 %v3729_v3 }
 0x36d   : > { %3446 = vmatprep.subr.bf16.mxu1 %v4093_v1 }
 0x370   : > { %3447 = vmatpush3.bf16.msra.mxu1 %v3730_v4 }
 0x371   : > { %3500 = vmatprep.subr.bf16.mxu1 %v4093_v1 }
 0x373   : > { %3449 = vmatmul.mubr.bf16.vlgmr.msra.gmra.mrb[8].mxu1 %v1223_v60 }
 0x374   : > { %3516 = vmatprep.mubr.msk.bf16.mxu1 %vm4094_vm0, %v4093_v1 }
 0x426   : > { %v1329_v6 = vpop.f32.mrb[4].mxu1  ;;  %v1440_v7 = vpop.f32.mrb[8].mxu0 }
 0x427   : > { %v1441_v8 = vadd.f32 %v3194_v5, %v1440_v7  ;;  %v3410_v9 = vpop.f32.mrb[5].mxu1  ;;  %v3430_v10 = vpop.f32.mrb[9].mxu0  ;;  %v1330_v17 = vadd.f32 %v3185_v11, %v1329_v6 }
 0x428   : > { %v1332_v13 = vpop.f32.mrb[6].mxu1  ;;  %v1443_v14 = vpop.f32.mrb[10].mxu0 }
 0x429   : > { %1700 = vrot.lane.b32.xlu1 %v1441_v8, %s4095_s1  ;;  %1697 = vrot.lane.b32.xlu0 %v1441_v8, %s4096_s8  ;;  %v3411_v15 = vpop.f32.mrb[7].mxu1  ;;  %v3431_v16 = vpop.f32.mrb[11].mxu0 }
 0x42d   : > { %1703 = vrot.lane.b32.xlu1 %v1441_v8, %s4097_s5  ;;  %1558 = vrot.lane.b32.xlu0 %v1330_v17, %s4096_s8 }
 0x431   : > { %1561 = vrot.lane.b32.xlu1 %v1330_v17, %s4095_s1  ;;  %1564 = vrot.lane.b32.xlu0 %v1330_v17, %s4097_s5 }
 0x446   : > { %v4662_v18 = vpop.f32.mrb[8].mxu1 }
 0x447   : > { %v3450_v19 = vpop.f32.mrb[9].mxu1 }
 0x448   : > { %v1554_v20 = vpop.f32.mrb[10].mxu1 }
 0x449   : > { %v3451_v21 = vpop.f32.mrb[11].mxu1 }
 0x49b   : > { %v1701_v28 = vpop.permute.xlu1 %1700  ;;  %v1698_v29 = vpop.permute.xlu0 %1697 }
 0x49c   : > { %v1706_v32 = vcombine.low %v1441_v8, %v1701_v28  ;;  %v1707_v33 = vcombine.high %v1441_v8, %v1701_v28 }
 0x49e   : > { %v1714_v39 = vrot.slane %v1706_v32, %v4665_v31  ;;  %v1721_v40 = vrot.slane %v1707_v33, %v4665_v31 }
 0x49f   : > { %v1704_v34 = vpop.permute.xlu1 %1703  ;;  %v1559_v35 = vpop.permute.xlu0 %1558 }
 0x4a0   : > { %v1722_v36 = vcombine.low %v1698_v29, %v1704_v34  ;;  %v1723_v37 = vcombine.high %v1698_v29, %v1704_v34 }
 0x4a2   : > { %v1730_v41 = vrot.slane %v1722_v36, %v4665_v31  ;;  %v1737_v12 = vrot.slane %v1723_v37, %v4665_v31 }
 0x4a3   : > { %v1562_v42 = vpop.permute.xlu1 %1561  ;;  %v1565_v43 = vpop.permute.xlu0 %1564 }
 0x4a4   : > { %v1738_v44 = vcombine.low %v1714_v39, %v1730_v41  ;;  %v1739_v45 = vcombine.high %v1714_v39, %v1730_v41  ;;  %v1754_v46 = vcombine.low %v1721_v40, %v1737_v12  ;;  %v1567_v47 = vcombine.low %v1330_v17, %v1562_v42 }
 0x4a5   : > { %v1568_v48 = vcombine.high %v1330_v17, %v1562_v42  ;;  %v1583_v49 = vcombine.low %v1559_v35, %v1565_v43  ;;  %v1584_v50 = vcombine.high %v1559_v35, %v1565_v43 }
 0x4a6   : > { %v1746_v51 = vrot.slane %v1738_v44, %v4667_v38  ;;  %v1753_v52 = vrot.slane %v1739_v45, %v4667_v38  ;;  %v1761_v53 = vrot.slane %v1754_v46, %v4667_v38  ;;  %v1575_v54 = vrot.slane %v1567_v47, %v4665_v31 }
 0x4a7   : > { %v1582_v55 = vrot.slane %v1568_v48, %v4665_v31  ;;  %v1591_v57 = vrot.slane %v1583_v49, %v4665_v31  ;;  %v1598_v58 = vrot.slane %v1584_v50, %v4665_v31 }
 0x4a8   : > { %v1764_v59 = vcombine.low %v1746_v51, %v1753_v52  ;;  %v3213_v60 = vcombine.high %v1746_v51, %v1753_v52  ;;  %v1787_v61 = vcombine.high %v1761_v53, %v4093_v1  ;;  %v1786_v4 = vrot.slane %v1761_v53, %v4665_v31 }
 0x4a9   : > { %v1599_v62 = vcombine.low %v1575_v54, %v1591_v57  ;;  %v1600_v63 = vcombine.high %v1575_v54, %v1591_v57  ;;  %v1615_v0 = vcombine.low %v1582_v55, %v1598_v58 }
 0x4aa   : > { %v1771_v2 = vrot.slane %v1764_v59, %v4665_v31  ;;  %v1779_v3 = vrot.slane %v3213_v60, %v4665_v31  ;;  %v1794_v5 = vrot.slane %v1787_v61, %v4665_v31 }
 0x4ab   : > { %v1607_v6 = vrot.slane %v1599_v62, %v4667_v38  ;;  %v1614_v7 = vrot.slane %v1600_v63, %v4667_v38  ;;  %v1622_v8 = vrot.slane %v1615_v0, %v4667_v38 }
 0x4ac   : > { %v1795_v9 = vcombine.low %v1771_v2, %v1779_v3  ;;  %v1811_v10 = vcombine.low %v1786_v4, %v1794_v5  ;;  %v1796_v30 = vcombine.high %v1771_v2, %v1779_v3  ;;  %v1812_v32 = vcombine.high %v1786_v4, %v1794_v5 }
 0x4ad   : > { %v1625_v11 = vcombine.low %v1607_v6, %v1614_v7  ;;  %v3212_v13 = vcombine.high %v1607_v6, %v1614_v7  ;;  %v1648_v14 = vcombine.high %v1622_v8, %v4093_v1  ;;  %v1647_v20 = vrot.slane %v1622_v8, %v4665_v31 }
 0x4ae   : > { %v1803_v15 = vrot.slane %v1795_v9, %v4667_v38  ;;  %v1819_v16 = vrot.slane %v1811_v10, %v4667_v38  ;;  %v1810_v35 = vrot.slane %v1796_v30, %v4667_v38  ;;  %v1826_v36 = vrot.slane %v1812_v32, %v4667_v38 }
 0x4af   : > { %v1632_v17 = vrot.slane %v1625_v11, %v4665_v31  ;;  %v1640_v19 = vrot.slane %v3212_v13, %v4665_v31  ;;  %v1655_v21 = vrot.slane %v1648_v14, %v4665_v31  ;;  %v3203_v14 = vld [vmem:[%s4950_s22] ss:$0 sm:$0xff] }
 0x4b0   : > { %v1827_v22 = vcombine.low %v1803_v15, %v1819_v16  ;;  %v1828_v29 = vcombine.high %v1803_v15, %v1819_v16  ;;  %v1829_v40 = vcombine.low %v1810_v35, %v1826_v36  ;;  %v1830_v48 = vcombine.high %v1810_v35, %v1826_v36 }
 0x4b1   : > { %v1656_v23 = vcombine.low %v1632_v17, %v1640_v19  ;;  %v1672_v24 = vcombine.low %v1647_v20, %v1655_v21  ;;  %v1657_v41 = vcombine.high %v1632_v17, %v1640_v19  ;;  %v1673_v12 = vcombine.high %v1647_v20, %v1655_v21 }
 0x4b2   : > { %v1831_v25 = vpack.c.bf16 %v1827_v22, %v1827_v22  ;;  %v1832_v34 = vpack.c.bf16 %v1828_v29, %v1828_v29  ;;  %v1833_v43 = vpack.c.bf16 %v1829_v40, %v1829_v40  ;;  %v1834_v50 = vpack.c.bf16 %v1830_v48, %v1830_v48 }
 0x4b3   : > { %v1680_v26 = vrot.slane %v1672_v24, %v4667_v38  ;;  %v1664_v27 = vrot.slane %v1656_v23, %v4667_v38  ;;  %v1687_v44 = vrot.slane %v1673_v12, %v4667_v38  ;;  %v1671_v46 = vrot.slane %v1657_v41, %v4667_v38 }
 0x4b4   : > { %v1979_v28 = vsel %vm1974_vm3, %v1831_v25, 0  ;;  %v2025_v39 = vsel %vm1974_vm3, %v1832_v34, 0  ;;  %v2071_v47 = vsel %vm1974_vm3, %v1833_v43, 0  ;;  %v2117_v52 = vsel %vm1974_vm3, %v1834_v50, 0 }
 0x4b5   : > { %3453 = vmatpush3.bf16.xpose.msra.mxu0 %v1979_v28  ;;  %v1688_v33 = vcombine.low %v1664_v27, %v1680_v26  ;;  %v1689_v42 = vcombine.high %v1664_v27, %v1680_v26  ;;  %v1690_v49 = vcombine.low %v1671_v46, %v1687_v44  ;;  %v1691_v53 = vcombine.high %v1671_v46, %v1687_v44 }
 0x4b6   : > { %3458 = vmatprep.subr.bf16.mxu0 %v4093_v1  ;;  %v1552_v15 = vadd.f32 %v3203_v14, %v4662_v18 }
 0x4b7   : > { %v1692_v37 = vpack.c.bf16 %v1688_v33, %v1688_v33  ;;  %v1693_v45 = vpack.c.bf16 %v1689_v42, %v1689_v42  ;;  %v1694_v51 = vpack.c.bf16 %v1690_v49, %v1690_v49  ;;  %v1695_v54 = vpack.c.bf16 %v1691_v53, %v1691_v53 }
 0x4bc   : > { %3455 = vmatmul.mubr.msk.bf16.vlgmr.msra.gmra.mrb[12].mxu0 %vm1974_vm3, %v1692_v37 }
 0x4bd   : > { %3459 = vmatpush3.bf16.xpose.msra.mxu0 %v2025_v39  ;;  %3460 = vmatprep.mubr.msk.bf16.mxu0 %vm4094_vm0, %v4093_v1 }
 0x4be   : > { %3464 = vmatprep.subr.bf16.mxu0 %v4093_v1 }
 0x4c4   : > { %3461 = vmatmul.mubr.msk.bf16.vlgmr.msra.gmra.mrb[16].mxu0 %vm1974_vm3, %v1693_v45 }
 0x4c5   : > { %3465 = vmatpush3.bf16.xpose.msra.mxu0 %v2071_v47  ;;  %3466 = vmatprep.mubr.msk.bf16.mxu0 %vm4094_vm0, %v4093_v1 }
 0x4c6   : > { %3470 = vmatprep.subr.bf16.mxu0 %v4093_v1 }
 0x4cc   : > { %3467 = vmatmul.mubr.msk.bf16.vlgmr.msra.gmra.mrb[20].mxu0 %vm1974_vm3, %v1694_v51 }
 0x4cd   : > { %3471 = vmatpush3.bf16.xpose.msra.mxu0 %v2117_v52  ;;  %3472 = vmatprep.mubr.msk.bf16.mxu0 %vm4094_vm0, %v4093_v1 }
 0x4ce   : > { %3476 = vmatprep.subr.bf16.mxu0 %v4093_v1 }
 0x4d4   : > { %3473 = vmatmul.mubr.msk.bf16.vlgmr.msra.gmra.mrb[24].mxu0 %vm1974_vm3, %v1695_v54 }
 0x4d5   : > { %3478 = vmatprep.mubr.msk.bf16.mxu0 %vm4094_vm0, %v4093_v1 }
 0x58f   : > { %v2015_v55 = vpop.f32.mrb[12].mxu0 }
 0x590   : > { %v3456_v57 = vpop.f32.mrb[13].mxu0  ;;  %v2160_v58 = vsel %vm2159_vm4, %v2015_v55, -inf }
 0x591   : > { %2161 = vmax.xlane.f32.xlu1 %v2160_v58  ;;  %v2018_v59 = vpop.f32.mrb[14].mxu0 }
 0x592   : > { %v3457_v60 = vpop.f32.mrb[15].mxu0 }
 0x597   : > { %v2061_v61 = vpop.f32.mrb[16].mxu0 }
 0x598   : > { %v3462_v62 = vpop.f32.mrb[17].mxu0  ;;  %v2163_v63 = vsel %vm2159_vm4, %v2061_v61, -inf }
 0x599   : > { %2164 = vmax.xlane.f32.xlu0 %v2163_v63  ;;  %v2064_v0 = vpop.f32.mrb[18].mxu0 }
 0x59a   : > { %v3463_v2 = vpop.f32.mrb[19].mxu0 }
 0x59f   : > { %v2107_v3 = vpop.f32.mrb[20].mxu0 }
 0x5a0   : > { %v3468_v4 = vpop.f32.mrb[21].mxu0  ;;  %v2166_v5 = vsel %vm2159_vm4, %v2107_v3, -inf }
 0x5a1   : > { %2167 = vmax.xlane.f32.xlu0 %v2166_v5  ;;  %v2110_v6 = vpop.f32.mrb[22].mxu0 }
 0x5a2   : > { %v3469_v7 = vpop.f32.mrb[23].mxu0 }
 0x5a7   : > { %v2153_v8 = vpop.f32.mrb[24].mxu0 }
 0x5a8   : > { %v3474_v9 = vpop.f32.mrb[25].mxu0  ;;  %v2169_v10 = vsel %vm2159_vm4, %v2153_v8, -inf }
 0x5a9   : > { %2170 = vmax.xlane.f32.xlu1 %v2169_v10  ;;  %v2156_v11 = vpop.f32.mrb[26].mxu0 }
 0x5aa   : > { %v3475_v13 = vpop.f32.mrb[27].mxu0 }
 0x5ba   : > { %1836 = vrot.lane.b32.xlu1 %v1552_v15, %s4096_s8 }
 0x5be   : > { %1842 = vrot.lane.b32.xlu1 %v1552_v15, %s4097_s5 }
 0x61e   : > { %v2162_v16 = vpop.xlane.xlu1 %2161 }
 0x61f   : > { %v2172_v17 = vsub.f32 %v2015_v55, %v2162_v16 }
 0x621   : > { %v2176_v19 = vmul.f32 1.442695, %v2172_v17 }
 0x623   : > { %3755 = vpow2.f32 %v2176_v19 }
 0x626   : > { %v2165_v20 = vpop.xlane.xlu0 %2164 }
 0x627   : > { %v2173_v21 = vsub.f32 %v2061_v61, %v2165_v20 }
 0x629   : > { %v2178_v22 = vmul.f32 1.442695, %v2173_v21 }
 0x62b   : > { %3757 = vpow2.f32 %v2178_v22 }
 0x62d   : > { %v3756_v23 = vpop.eup %3755 }
 0x62e   : > { %v2184_v24 = vsel %vm2159_vm4, %v3756_v23, 0.0  ;;  %v2168_v26 = vpop.xlane.xlu0 %2167 }
 0x62f   : > { %2185 = vadd.xlane.f32.xlu0 %v2184_v24  ;;  %v2174_v27 = vsub.f32 %v2107_v3, %v2168_v26 }
 0x631   : > { %v2180_v29 = vmul.f32 1.442695, %v2174_v27 }
 0x633   : > { %3759 = vpow2.f32 %v2180_v29 }
 0x635   : > { %v4732_v25 = vpop.eup %3757 }
 0x636   : > { %v2187_v18 = vsel %vm2159_vm4, %v4732_v25, 0.0  ;;  %v2171_v28 = vpop.xlane.xlu1 %2170 }
 0x637   : > { %2188 = vadd.xlane.f32.xlu1 %v2187_v18  ;;  %v2175_v30 = vsub.f32 %v2153_v8, %v2171_v28 }
 0x639   : > { %v2182_v32 = vmul.f32 1.442695, %v2175_v30 }
 0x63a   : > { %v1837_v37 = vpop.permute.xlu1 %1836 }
 0x63b   : > { %3761 = vpow2.f32 %v2182_v32 }
 0x63d   : > { %v4737_v33 = vpop.eup %3759 }
 0x63e   : > { %v2190_v34 = vsel %vm2159_vm4, %v4737_v33, 0.0  ;;  %v1843_v39 = vpop.permute.xlu1 %1842 }
 0x63f   : > { %v1861_v41 = vcombine.low %v1837_v37, %v1843_v39  ;;  %v1862_v12 = vcombine.high %v1837_v37, %v1843_v39 }
 0x641   : > { %v1869_v45 = vrot.slane %v1861_v41, %v4665_v31  ;;  %v1876_v46 = vrot.slane %v1862_v12, %v4665_v31  ;;  %v3733_v41 = vld [vmem:[#allocation12 + $0x10] sm:$0xff]   ;;  %v3734_v12 = vld [vmem:[#allocation12 + $0x18] sm:$0xff]  }
 0x645   : > { %1839 = vrot.lane.b32.xlu0 %v1552_v15, %s4095_s1  ;;  %v4741_v35 = vpop.eup %3761 }
 0x646   : > { %v2193_v36 = vsel %vm2159_vm4, %v4741_v35, 0.0 }
 0x664   : > { %2191 = vadd.xlane.f32.xlu0 %v2190_v34 }
 0x668   : > { %2194 = vadd.xlane.f32.xlu0 %v2193_v36 }
 0x6bc   : > { %v2186_v40 = vpop.xlane.xlu0 %2185 }
 0x6bd   : > { %3763 = vrcp.f32 %v2186_v40  ;;  %v3732_v40 = vld [vmem:[#allocation12 + $0x8] sm:$0xff]  }
 0x6c0   : > { %v1840_v42 = vpop.permute.xlu0 %1839 }
 0x6c1   : > { %v1845_v43 = vcombine.low %v1552_v15, %v1840_v42  ;;  %v1846_v44 = vcombine.high %v1552_v15, %v1840_v42  ;;  %v3736_v42 = vld [vmem:[#allocation12 + $0x28] sm:$0xff]  }
 0x6c3   : > { %v1853_v47 = vrot.slane %v1845_v43, %v4665_v31  ;;  %v1860_v48 = vrot.slane %v1846_v44, %v4665_v31 }
 0x6c4   : > { %v2189_v63 = vpop.xlane.xlu1 %2188 }
 0x6c5   : > { %v1877_v49 = vcombine.low %v1853_v47, %v1869_v45  ;;  %v1878_v50 = vcombine.high %v1853_v47, %v1869_v45  ;;  %v1893_v51 = vcombine.low %v1860_v48, %v1876_v46  ;;  %3765 = vrcp.f32 %v2189_v63 }
 0x6c7   : > { %v1885_v52 = vrot.slane %v1877_v49, %v4667_v38  ;;  %v1892_v53 = vrot.slane %v1878_v50, %v4667_v38  ;;  %v1900_v54 = vrot.slane %v1893_v51, %v4667_v38  ;;  %v3764_v5 = vpop.eup %3763 }
 0x6c8   : > { %v2200_v10 = vmul.f32 %v3764_v5, %v3756_v23 }
 0x6c9   : > { %v1903_v55 = vcombine.low %v1885_v52, %v1892_v53  ;;  %v3214_v57 = vcombine.high %v1885_v52, %v1892_v53  ;;  %v1926_v58 = vcombine.high %v1900_v54, %v4093_v1  ;;  %v1925_v61 = vrot.slane %v1900_v54, %v4665_v31 }
 0x6ca   : > { %v2204_v17 = vpack.c.bf16 %v2200_v10, %v2200_v10 }
 0x6cb   : > { %v1910_v59 = vrot.slane %v1903_v55, %v4665_v31  ;;  %v1918_v60 = vrot.slane %v3214_v57, %v4665_v31  ;;  %v1933_v62 = vrot.slane %v1926_v58, %v4665_v31 }
 0x6cd   : > { %v1934_v0 = vcombine.low %v1910_v59, %v1918_v60  ;;  %v1950_v2 = vcombine.low %v1925_v61, %v1933_v62  ;;  %v1935_v8 = vcombine.high %v1910_v59, %v1918_v60  ;;  %v1951_v9 = vcombine.high %v1925_v61, %v1933_v62 }
 0x6cf   : > { %v1942_v3 = vrot.slane %v1934_v0, %v4667_v38  ;;  %v1958_v4 = vrot.slane %v1950_v2, %v4667_v38  ;;  %v1949_v15 = vrot.slane %v1935_v8, %v4667_v38  ;;  %v1965_v16 = vrot.slane %v1951_v9, %v4667_v38  ;;  %v3766_v19 = vpop.eup %3765  ;;  %v3737_v8 = vld [vmem:[#allocation12 + $0x30] sm:$0xff]  }
 0x6d0   : > { %v2201_v22 = vmul.f32 %v3766_v19, %v4732_v25 }
 0x6d1   : > { %v1966_v6 = vcombine.low %v1942_v3, %v1958_v4  ;;  %v1967_v7 = vcombine.high %v1942_v3, %v1958_v4  ;;  %v1968_v21 = vcombine.low %v1949_v15, %v1965_v16  ;;  %v1969_v28 = vcombine.high %v1949_v15, %v1965_v16  ;;  %v3738_v16 = vld [vmem:[#allocation12 + $0x38] sm:$0xff]  }
 0x6d2   : > { %v2205_v24 = vpack.c.bf16 %v2201_v22, %v2201_v22 }
 0x6d3   : > { %v1970_v11 = vpack.c.bf16 %v1966_v6, %v1966_v6  ;;  %v1971_v14 = vpack.c.bf16 %v1967_v7, %v1967_v7  ;;  %v1972_v23 = vpack.c.bf16 %v1968_v21, %v1968_v21  ;;  %v1973_v30 = vpack.c.bf16 %v1969_v28, %v1969_v28 }
 0x6d5   : > { %v2214_v13 = vsel %vm2212_vm5, %v1970_v11, 0  ;;  %v2260_v20 = vsel %vm2212_vm5, %v1971_v14, 0  ;;  %v2306_v18 = vsel %vm2212_vm5, %v1972_v23, 0  ;;  %v2352_v36 = vsel %vm2212_vm5, %v1973_v30, 0 }
 0x6d6   : > { %3477 = vmatpush3.bf16.msra.mxu0 %v2214_v13 }
 0x6d7   : > { %3482 = vmatprep.subr.bf16.mxu0 %v4093_v1 }
 0x6d9   : > { %3479 = vmatmul.mubr.msk.bf16.vlgmr.msra.gmra.mrb[28].mxu0 %vm2208_vm6, %v2204_v17 }
 0x6da   : > { %3483 = vmatpush3.bf16.msra.mxu0 %v2260_v20  ;;  %3484 = vmatprep.mubr.msk.bf16.mxu0 %vm4094_vm0, %v4093_v1 }
 0x6db   : > { %3488 = vmatprep.subr.bf16.mxu0 %v4093_v1 }
 0x6e1   : > { %3485 = vmatmul.mubr.msk.bf16.vlgmr.msra.gmra.mrb[32].mxu0 %vm2208_vm6, %v2205_v24 }
 0x6e2   : > { %3489 = vmatpush3.bf16.msra.mxu0 %v2306_v18  ;;  %3490 = vmatprep.mubr.msk.bf16.mxu0 %vm4094_vm0, %v4093_v1 }
 0x6e3   : > { %3494 = vmatprep.subr.bf16.mxu0 %v4093_v1 }
 0x6f1   : > { %v2192_v26 = vpop.xlane.xlu0 %2191 }
 0x6f2   : > { %3767 = vrcp.f32 %v2192_v26 }
 0x6f5   : > { %v2195_v27 = vpop.xlane.xlu0 %2194 }
 0x6f6   : > { %3769 = vrcp.f32 %v2195_v27 }
 0x6fc   : > { %v3768_v25 = vpop.eup %3767 }
 0x6fd   : > { %v2202_v29 = vmul.f32 %v3768_v25, %v4737_v33  ;;  %v3731_v33 = vld [vmem:[#allocation12] sm:$0xff]  }
 0x6fe   : > { %3501 = vmatpush3.bf16.msra.mxu1 %v3731_v33 }
 0x6ff   : > { %v2206_v32 = vpack.c.bf16 %v2202_v29, %v2202_v29  ;;  %3502 = vmatprep.subr.bf16.mxu1 %v4093_v1 }
 0x700   : > { %v3770_v34 = vpop.eup %3769 }
 0x701   : > { %3491 = vmatmul.mubr.msk.bf16.vlgmr.msra.gmra.mrb[36].mxu0 %vm2208_vm6, %v2206_v32  ;;  %v2203_v37 = vmul.f32 %v3770_v34, %v4741_v35  ;;  %v3735_v35 = vld [vmem:[#allocation12 + $0x20] sm:$0xff]  }
 0x702   : > { %3495 = vmatpush3.bf16.msra.mxu0 %v2352_v36  ;;  %3496 = vmatprep.mubr.msk.bf16.mxu0 %vm4094_vm0, %v4093_v1 }
 0x703   : > { %3520 = vmatprep.subr.bf16.mxu0 %v4093_v1  ;;  %v2207_v39 = vpack.c.bf16 %v2203_v37, %v2203_v37  ;;  %3503 = vmatpush3.bf16.msra.mxu1 %v3732_v40 }
 0x704   : > { %3504 = vmatprep.subr.bf16.mxu1 %v4093_v1 }
 0x707   : > { %3505 = vmatpush3.bf16.msra.mxu1 %v3733_v41  ;;  %v3739_v41 = vld [vmem:[#allocation13] sm:$0xff]  }
 0x708   : > { %3506 = vmatprep.subr.bf16.mxu1 %v4093_v1 }
 0x709   : > { %3497 = vmatmul.mubr.msk.bf16.vlgmr.msra.gmra.mrb[40].mxu0 %vm2208_vm6, %v2207_v39 }
 0x70a   : > { %3536 = vmatprep.mubr.msk.bf16.mxu0 %vm4094_vm0, %v4093_v1  ;;  %3521 = vmatpush3.bf16.msra.mxu0 %v3739_v41 }
 0x70b   : > { %3507 = vmatpush3.bf16.msra.mxu1 %v3734_v12  ;;  %3522 = vmatprep.subr.bf16.mxu0 %v4093_v1  ;;  %v3224_v12 = vld [vmem:[%s4951_s6] ss:$0 sm:$0xff] }
 0x70c   : > { %3508 = vmatprep.subr.bf16.mxu1 %v4093_v1 }
 0x70f   : > { %3509 = vmatpush3.bf16.msra.mxu1 %v3735_v35 }
 0x710   : > { %3510 = vmatprep.subr.bf16.mxu1 %v4093_v1 }
 0x713   : > { %3511 = vmatpush3.bf16.msra.mxu1 %v3736_v42 }
 0x714   : > { %3512 = vmatprep.subr.bf16.mxu1 %v4093_v1 }
 0x717   : > { %3513 = vmatpush3.bf16.msra.mxu1 %v3737_v8 }
 0x718   : > { %3514 = vmatprep.subr.bf16.mxu1 %v4093_v1 }
 0x71b   : > { %3515 = vmatpush3.bf16.msra.mxu1 %v3738_v16  ;;  %v3753_v16 = vld [vmem:[#allocation15 + $0x30] sm:$0xff]  }
 0x71c   : > { %3540 = vmatprep.subr.bf16.mxu1 %v4093_v1 }
 0x7ac   : > { %v2250_v43 = vpop.f32.mrb[28].mxu0 }
 0x7ad   : > { %v3480_v44 = vpop.f32.mrb[29].mxu0 }
 0x7ae   : > { %v2253_v45 = vpop.f32.mrb[30].mxu0 }
 0x7af   : > { %v3481_v46 = vpop.f32.mrb[31].mxu0 }
 0x7b4   : > { %v2296_v47 = vpop.f32.mrb[32].mxu0 }
 0x7b5   : > { %v3486_v48 = vpop.f32.mrb[33].mxu0 }
 0x7b6   : > { %v2299_v49 = vpop.f32.mrb[34].mxu0 }
 0x7b7   : > { %v3487_v50 = vpop.f32.mrb[35].mxu0 }
 0x7b8   : > { %v3740_v50 = vld [vmem:[#allocation13 + $0x8] sm:$0xff]  }
 0x7b9   : > { %3523 = vmatpush3.bf16.msra.mxu0 %v3740_v50 }
 0x7ba   : > { %3524 = vmatprep.subr.bf16.mxu0 %v4093_v1 }
 0x7d4   : > { %v2342_v51 = vpop.f32.mrb[36].mxu0 }
 0x7d5   : > { %v2394_v52 = vcombine.low %v2250_v43, %v2342_v51  ;;  %v2395_v53 = vcombine.high %v2250_v43, %v2342_v51  ;;  %v3492_v54 = vpop.f32.mrb[37].mxu0  ;;  %v3741_v51 = vld [vmem:[#allocation13 + $0x10] sm:$0xff]  }
 0x7d6   : > { %v2345_v55 = vpop.f32.mrb[38].mxu0  ;;  %3525 = vmatpush3.bf16.msra.mxu0 %v3741_v51  ;;  %v3745_v54 = vld [vmem:[#allocation13 + $0x30] sm:$0xff]  }
 0x7d7   : > { %v3493_v57 = vpop.f32.mrb[39].mxu0  ;;  %v2402_v63 = vrot.slane %v2394_v52, %v4665_v31  ;;  %v2409_v0 = vrot.slane %v2395_v53, %v4665_v31  ;;  %3526 = vmatprep.subr.bf16.mxu0 %v4093_v1  ;;  %v3742_v52 = vld [vmem:[#allocation13 + $0x18] sm:$0xff]   ;;  %v3743_v53 = vld [vmem:[#allocation13 + $0x20] sm:$0xff]  }
 0x7d8   : > { %v3746_v55 = vld [vmem:[#allocation13 + $0x38] sm:$0xff]   ;;  %v3747_v57 = vld [vmem:[#allocation15] sm:$0xff]  }
 0x7da   : > { %3527 = vmatpush3.bf16.msra.mxu0 %v3742_v52 }
 0x7db   : > { %3528 = vmatprep.subr.bf16.mxu0 %v4093_v1 }
 0x7dc   : > { %v2388_v58 = vpop.f32.mrb[40].mxu0 }
 0x7dd   : > { %v2410_v59 = vcombine.low %v2296_v47, %v2388_v58  ;;  %v2411_v60 = vcombine.high %v2296_v47, %v2388_v58  ;;  %v3498_v61 = vpop.f32.mrb[41].mxu0  ;;  %v3748_v58 = vld [vmem:[#allocation15 + $0x8] sm:$0xff]  }
 0x7de   : > { %v2391_v62 = vpop.f32.mrb[42].mxu0  ;;  %3529 = vmatpush3.bf16.msra.mxu0 %v3743_v53  ;;  %v3751_v61 = vld [vmem:[#allocation15 + $0x20] sm:$0xff]  }
 0x7df   : > { %v2418_v2 = vrot.slane %v2410_v59, %v4665_v31  ;;  %v2425_v3 = vrot.slane %v2411_v60, %v4665_v31  ;;  %v3499_v4 = vpop.f32.mrb[43].mxu0  ;;  %3530 = vmatprep.subr.bf16.mxu0 %v4093_v1  ;;  %v3749_v59 = vld [vmem:[#allocation15 + $0x10] sm:$0xff]   ;;  %v3750_v60 = vld [vmem:[#allocation15 + $0x18] sm:$0xff]   ;;  %v3752_v62 = vld [vmem:[#allocation15 + $0x28] sm:$0xff]  }
 0x7e1   : > { %v2426_v5 = vcombine.low %v2402_v63, %v2418_v2  ;;  %v2427_v6 = vcombine.high %v2402_v63, %v2418_v2  ;;  %v2442_v7 = vcombine.low %v2409_v0, %v2425_v3 }
 0x7e3   : > { %v2434_v9 = vrot.slane %v2426_v5, %v4667_v38  ;;  %v2441_v10 = vrot.slane %v2427_v6, %v4667_v38  ;;  %v2449_v11 = vrot.slane %v2442_v7, %v4667_v38 }
 0x7e5   : > { %v2452_v13 = vcombine.low %v2434_v9, %v2441_v10  ;;  %v3223_v14 = vcombine.high %v2434_v9, %v2441_v10  ;;  %v2475_v15 = vcombine.high %v2449_v11, %v4093_v1  ;;  %v2474_v17 = vrot.slane %v2449_v11, %v4665_v31  ;;  %v3233_v9 = vld [vmem:[%s4952_s28] ss:$0 sm:$0xff] }
 0x7e7   : > { %v2459_v19 = vrot.slane %v2452_v13, %v4665_v31  ;;  %v2467_v20 = vrot.slane %v3223_v14, %v4665_v31  ;;  %v2482_v21 = vrot.slane %v2475_v15, %v4665_v31 }
 0x7e9   : > { %v2484_v22 = vcombine.high %v2459_v19, %v2467_v20  ;;  %v2500_v23 = vcombine.high %v2474_v17, %v2482_v21  ;;  %v2483_v24 = vcombine.low %v2459_v19, %v2467_v20  ;;  %v2499_v18 = vcombine.low %v2474_v17, %v2482_v21  ;;  %v3754_v17 = vld [vmem:[#allocation15 + $0x38] sm:$0xff]   ;;  %v3235_v19 = vld [vmem:[%s4954_s0] ss:$0 sm:$0xff] }
 0x7eb   : > { %v2498_v26 = vrot.slane %v2484_v22, %v4667_v38  ;;  %v2514_v27 = vrot.slane %v2500_v23, %v4667_v38  ;;  %v2491_v28 = vrot.slane %v2483_v24, %v4667_v38  ;;  %v2507_v25 = vrot.slane %v2499_v18, %v4667_v38 }
 0x7ed   : > { %v2517_v29 = vcombine.low %v2498_v26, %v2514_v27  ;;  %v2516_v30 = vcombine.high %v2491_v28, %v2507_v25  ;;  %v2518_v32 = vcombine.high %v2498_v26, %v2514_v27  ;;  %v2515_v34 = vcombine.low %v2491_v28, %v2507_v25  ;;  %v3244_v27 = vld [vmem:[%s4955_s14] ss:$0 sm:$0xff] }
 0x7ef   : > { %2524 = vrot.lane.b32.xlu0 %v2517_v29, %s4095_s1  ;;  %2520 = vrot.lane.b32.xlu1 %v2516_v30, %s4097_s5  ;;  %s4953_s1 = sld [smem:[#allocation33_spill]] }
 0x7f3   : > { %2528 = vrot.lane.b32.xlu1 %v2518_v32, %s4096_s8  ;;  %s4958_s8 = sld [smem:[#allocation38_spill]] }
 0x7f5   : > { %v3234_v11 = vld [vmem:[%s4953_s1] ss:$0 sm:$0xff] }
 0x7f9   : > { %s907_s5 = scalar_lea.vmem %s4958_s8, %s3163_s7 }
 0x861   : > { %v2521_v31 = vpop.permute.xlu1 %2520  ;;  %v2525_v36 = vpop.permute.xlu0 %2524 }
 0x862   : > { %v2531_v37 = vsel %vm1974_vm3, %v2515_v34, %v2521_v31 }
 0x863   : > { %v2533_v33 = vsel %vm2532_vm7, %v2531_v37, %v2525_v36 }
 0x865   : > { %v2529_v39 = vpop.permute.xlu1 %2528 }
 0x866   : > { %v2535_v40 = vsel %vm2534_vm8, %v2533_v33, %v2529_v39 }
 0x867   : > { %v2536_v38 = vpack.c.bf16 %v2535_v40, %v2535_v40 }
 0x869   : > { %3517 = vmatmul.mubr.bf16.vlgmr.msra.gmra.mrb[12].mxu1 %v2536_v38 }
 0x86a   : > { %3556 = vmatprep.mubr.msk.bf16.mxu1 %vm4094_vm0, %v4093_v1  ;;  %3541 = vmatpush3.bf16.msra.mxu1 %v3747_v57 }
 0x86b   : > { %3542 = vmatprep.subr.bf16.mxu1 %v4093_v1 }
 0x86e   : > { %3543 = vmatpush3.bf16.msra.mxu1 %v3748_v58 }
 0x86f   : > { %3544 = vmatprep.subr.bf16.mxu1 %v4093_v1 }
 0x872   : > { %3545 = vmatpush3.bf16.msra.mxu1 %v3749_v59 }
 0x873   : > { %3546 = vmatprep.subr.bf16.mxu1 %v4093_v1 }
 0x876   : > { %3547 = vmatpush3.bf16.msra.mxu1 %v3750_v60 }
 0x877   : > { %3548 = vmatprep.subr.bf16.mxu1 %v4093_v1 }
 0x87a   : > { %3549 = vmatpush3.bf16.msra.mxu1 %v3751_v61 }
 0x87b   : > { %3550 = vmatprep.subr.bf16.mxu1 %v4093_v1 }
 0x87e   : > { %3551 = vmatpush3.bf16.msra.mxu1 %v3752_v62 }
 0x87f   : > { %3552 = vmatprep.subr.bf16.mxu1 %v4093_v1 }
 0x882   : > { %3553 = vmatpush3.bf16.msra.mxu1 %v3753_v16 }
 0x883   : > { %3554 = vmatprep.subr.bf16.mxu1 %v4093_v1 }
 0x886   : > { %3555 = vmatpush3.bf16.msra.mxu1 %v3754_v17 }
 0x93c   : > { %v2642_v35 = vpop.f32.mrb[12].mxu1 }
 0x93d   : > { %v2643_v42 = vadd.f32 %v3224_v12, %v2642_v35  ;;  %v3518_v43 = vpop.f32.mrb[13].mxu1 }
 0x93e   : > { %v2645_v44 = vpop.f32.mrb[14].mxu1  ;;  %v3253_v43 = vld [vmem:[%s4956_s23] ss:$0 sm:$0xff] }
 0x93f   : > { %v2648_v45 = vadd.f32 %v2643_v42, %v4632_v56  ;;  %v3519_v46 = vpop.f32.mrb[15].mxu1  ;;  %v3744_v56 = vld [vmem:[#allocation13 + $0x28] sm:$0xff]  }
 0x940   : > { %3531 = vmatpush3.bf16.msra.mxu0 %v3744_v56 }
 0x941   : > { %v2652_v47 = vsel %vm2651_vm9, %v2648_v45, 0.0  ;;  %v2656_v48 = vmul.f32 %v2648_v45, %v2648_v45  ;;  %3532 = vmatprep.subr.bf16.mxu0 %v4093_v1 }
 0x942   : > { %2653 = vadd.xlane.f32.xlu1 %v2652_v47 }
 0x943   : > { %v2657_v49 = vsel %vm2651_vm9, %v2656_v48, 0.0 }
 0x944   : > { %2658 = vadd.xlane.f32.xlu0 %v2657_v49  ;;  %3533 = vmatpush3.bf16.msra.mxu0 %v3745_v54 }
 0x945   : > { %3534 = vmatprep.subr.bf16.mxu0 %v4093_v1 }
 0x948   : > { %3535 = vmatpush3.bf16.msra.mxu0 %v3746_v55 }
 0x9cf   : > { %v2654_v63 = vpop.xlane.xlu1 %2653 }
 0x9d0   : > { %v2655_v0 = vmul.f32 0.03125, %v2654_v63 }
 0x9d1   : > { %v2659_v2 = vpop.xlane.xlu0 %2658 }
 0x9d2   : > { %v2661_v3 = vmul.f32 %v2655_v0, %v2655_v0  ;;  %v2660_v4 = vmul.f32 0.03125, %v2659_v2  ;;  %v2663_v7 = vsub.f32 %v2648_v45, %v2655_v0  ;;  %v3254_v45 = vld [vmem:[%s4957_s20] ss:$0 sm:$0xff] }
 0x9d4   : > { %v2662_v5 = vsub.f32 %v2660_v4, %v2661_v3 }
 0x9d6   : > { %v2664_v6 = vadd.f32 1e-05, %v2662_v5 }
 0x9d8   : > { %3771 = vrsqrt.f32 %v2664_v6 }
 0x9e2   : > { %v3772_v8 = vpop.eup %3771 }
 0x9e3   : > { %v2666_v10 = vmul.f32 %v3772_v8, %v2663_v7 }
 0x9e5   : > { %v2673_v13 = vmul.f32 %v3233_v9, %v2666_v10 }
 0x9e7   : > { %v2680_v14 = vadd.f32 %v3234_v11, %v2673_v13 }
 0x9e9   : > { %v2681_v15 = vpack.c.bf16 %v2680_v14, %v2680_v14 }
 0x9eb   : > { %3537 = vmatmul.mubr.bf16.vlgmr.msra.gmra.mrb[44].mxu0 %v2681_v15 }
 0xabe   : > { %v2787_v20 = vpop.f32.mrb[44].mxu0 }
 0xabf   : > { %v2788_v21 = vadd.f32 %v3235_v19, %v2787_v20  ;;  %v3538_v22 = vpop.f32.mrb[45].mxu0 }
 0xac0   : > { %v2790_v23 = vpop.f32.mrb[46].mxu0 }
 0xac1   : > { %v2793_v24 = vmax.f32 %v2788_v21, 0.0  ;;  %v3539_v18 = vpop.f32.mrb[47].mxu0 }
 0xac3   : > { %v2794_v26 = vpack.c.bf16 %v2793_v24, %v2793_v24 }
 0xac5   : > { %3557 = vmatmul.mubr.bf16.vlgmr.msra.gmra.mrb[16].mxu1 %v2794_v26 }
 0xb98   : > { %v2900_v28 = vpop.f32.mrb[16].mxu1 }
 0xb99   : > { %v2901_v1 = vadd.f32 %v3244_v27, %v2900_v28  ;;  %v3558_v25 = vpop.f32.mrb[17].mxu1 }
 0xb9a   : > { %v2903_v29 = vpop.f32.mrb[18].mxu1 }
 0xb9b   : > { %v2906_v30 = vadd.f32 %v2901_v1, %v2680_v14  ;;  %v3559_v32 = vpop.f32.mrb[19].mxu1 }
 0xb9d   : > { %v2909_v34 = vsel %vm2651_vm9, %v2906_v30, 0.0  ;;  %v2913_v31 = vmul.f32 %v2906_v30, %v2906_v30 }
 0xb9e   : > { %2910 = vadd.xlane.f32.xlu0 %v2909_v34 }
 0xb9f   : > { %v2914_v36 = vsel %vm2651_vm9, %v2913_v31, 0.0 }
 0xba0   : > { %2915 = vadd.xlane.f32.xlu1 %v2914_v36 }
 0xc2b   : > { %v2911_v37 = vpop.xlane.xlu0 %2910 }
 0xc2c   : > { %v2912_v39 = vmul.f32 0.03125, %v2911_v37 }
 0xc2d   : > { %v2916_v33 = vpop.xlane.xlu1 %2915 }
 0xc2e   : > { %v2918_v40 = vmul.f32 %v2912_v39, %v2912_v39  ;;  %v2917_v38 = vmul.f32 0.03125, %v2916_v33  ;;  %v2920_v35 = vsub.f32 %v2906_v30, %v2912_v39 }
 0xc30   : > { %v2919_v41 = vsub.f32 %v2917_v38, %v2918_v40 }
 0xc32   : > { %v2921_v12 = vadd.f32 1e-05, %v2919_v41 }
 0xc34   : > { %3773 = vrsqrt.f32 %v2921_v12 }
 0xc3e   : > { %v3774_v42 = vpop.eup %3773 }
 0xc3f   : > { %v2923_v44 = vmul.f32 %v3774_v42, %v2920_v35 }
 0xc41   : > { %v2930_v46 = vmul.f32 %v3253_v43, %v2923_v44 }
 0xc43   : > { %v2937_v47 = vadd.f32 %v3254_v45, %v2930_v46 }
 0xc45   : > { %v2938_v48 = vpack.c.bf16 %v2937_v47, %v2937_v47 }
 0xc47   : > { %2939 = vst [vmem:[%s907_s5] sm:$0x7] %v2938_v48 }
 0xc48 PF: > { %p39_p10 = scmp.ge.s32.totalorder %s4456_s3, 4   ;;  %s4959_s5 = smov %s4071_s26 }
 0xc49   : > { %s4960_s26 = smov %s4075_s27  ;;  %s4961_s27 = smov %s4468_s21 }
 0xc4a   : > { %s4962_s28 = smov %s4456_s3  ;;  %41 = sbr.rel (!%p39_p10) target bundleno = 26 (0x1a), region = 202 }
 0xc51   :  { %2975 = vsyncpa [#allocation3], 1 }
 0xc52   :  { %2977 = vsyncpa [#allocation3 + $0x1], 1 }
 0xc53   :  { %2978 = vsyncpa [#allocation5], 1 }
 0xc54   :  { %2979 = vsyncpa [#allocation8], 1 }
 0xc55   :  { %2980 = vsyncpa [#allocation11], 1 }
 0xc56   :  { %2981 = vsyncpa [#allocation14], 1 }

</bundles_post_ra>
